<compile_context>
chip_gen: v7x
topology: tpu7x:2x2x1
jax: 0.10.0
libtpu: 0.0.40
codegen_flags: <defaults>
</compile_context>

<pallas_src>
import functools

import jax
import jax.numpy as jnp
from jax import lax
from jax.experimental import pallas as pl
from jax.experimental.pallas import tpu as pltpu


# Lane-aligned halo pad on each side of the flat H*W axis. 128 keeps the interior
# write 128-lane aligned; only W+1 of those lanes are actually read as halo.
_HALO = 128


def _fused_conv_block_kernel(x_ref, w1t_ref, b1_ref, w2t_ref, b2_ref, o_ref,
                             xflat_ref, midflat_ref, p1_ref, p2_ref, *, W):
    """Fused (Conv3x3+BN+ReLU) x2 for Nb batch elements, spatial-in-lanes layout.

    x_ref      : (Nb, Cin, H*W)            NCHW input, spatial flattened (lane-dense)
    w1t_ref    : (Cmid, 9*Cin)             im2col conv1 weights (BN scale folded)
    b1_ref     : (Cmid, 1)                 folded shift (conv bias + BN), stage 1
    w2t_ref    : (Cout, 9*Cmid)            im2col conv2 weights (BN scale folded)
    b2_ref     : (Cout, 1)                 folded shift, stage 2
    o_ref      : (Nb, Cout, H*W)           lane-dense output (already NCHW on reshape)
    xflat_ref  : (Cin,  _HALO+H*W+_HALO)   flat zero-halo scratch, stage 1
    midflat_ref: (Cmid, _HALO+H*W+_HALO)   flat zero-halo scratch, stage 2
    p1_ref     : (9*Cin,  H*W)             im2col patch scratch, stage 1
    p2_ref     : (9*Cmid, H*W)             im2col patch scratch, stage 2
    """
    Nb, Cin, HW = x_ref.shape
    Cmid = w1t_ref.shape[0]

    # Zero ONLY the halo strips (the interiors are fully overwritten below).
    # Must run every grid step: under "parallel" megacore sharding a core never
    # sees another core's scratch initialization. This is ~12 KiB per step.
    zx = jnp.zeros((Cin, _HALO), jnp.float32)
    xflat_ref[:, :_HALO] = zx
    xflat_ref[:, _HALO + HW:] = zx
    zm = jnp.zeros((Cmid, _HALO), jnp.float32)
    midflat_ref[:, :_HALO] = zm
    midflat_ref[:, _HALO + HW:] = zm

    # Horizontal-wrap masks (vertical out-of-range taps land in the zero halo).
    wpos = lax.broadcasted_iota(jnp.int32, (1, HW), 1) % W
    not_right = wpos != (W - 1)   # valid lanes for dx = +1 taps
    not_left = wpos != 0          # valid lanes for dx = -1 taps

    def build_patch(src_ref, patch_ref, c):
        # Tap-leading im2col: 9 full lane-dense slab writes of shape (c, H*W).
        for k in range(9):
            ky, kx = divmod(k, 3)
            dy, dx = ky - 1, kx - 1
            start = _HALO + dy * W + dx
            slab = src_ref[:, start:start + HW]
            if dx == 1:
                slab = jnp.where(not_right, slab, 0.0)
            elif dx == -1:
                slab = jnp.where(not_left, slab, 0.0)
            patch_ref[k * c:(k + 1) * c, :] = slab

    # Unrolled loop over the Nb batch elements in this grid step (amortizes the
    # per-grid-step pipeline overhead; scratches are fully rewritten each pass).
    for b in range(Nb):
        # ---------------- stage 1: conv3x3 -> folded BN -> ReLU ----------------
        xflat_ref[:, _HALO:_HALO + HW] = x_ref[b]          # 128-lane aligned store
        build_patch(xflat_ref, p1_ref, Cin)
        acc1 = jnp.dot(w1t_ref[...], p1_ref[...],
                       preferred_element_type=jnp.float32)  # (Cmid, H*W)
        y1 = jnp.maximum(acc1 + b1_ref[...], 0.0)

        # ---------------- stage 2: conv3x3 -> folded BN -> ReLU ----------------
        # Intermediate stays in VMEM, lane-dense: no relayout reshape needed.
        midflat_ref[:, _HALO:_HALO + HW] = y1
        build_patch(midflat_ref, p2_ref, Cmid)
        acc2 = jnp.dot(w2t_ref[...], p2_ref[...],
                       preferred_element_type=jnp.float32)  # (Cout, H*W)
        y2 = jnp.maximum(acc2 + b2_ref[...], 0.0)
        o_ref[b] = y2.astype(o_ref.dtype)                   # lane-dense, already NCHW


def _fold_conv_bn(w_oihw, bias, gamma, beta, mean, var, eps=1e-5):
    """Fold conv bias + eval-mode BN into transposed im2col weights / per-channel shift.

    w_oihw: (Cout, Cin, 3, 3) torch-layout weights.
    Returns: (Cout, 9*Cin) scale-folded weights (K index = (ky*3+kx)*Cin+ci), (Cout,) shift.
    """
    inv_std = 1.0 / jnp.sqrt(var + eps)
    scale = gamma * inv_std                                  # (Cout,)
    shift = (bias - mean) * scale + beta                     # (Cout,)
    cout = w_oihw.shape[0]
    # (Cout,Cin,3,3) -> (ky,kx,ci,co) -> (9*Cin, Cout); then transpose -> (Cout, 9*Cin).
    w_mat = jnp.transpose(w_oihw, (2, 3, 1, 0)).reshape(-1, cout) * scale[None, :]
    return w_mat.T, shift


def _pick_nb(n):
    """Batch elements per grid step: largest divisor of n that is <= 8."""
    for nb in (8, 4, 2, 1):
        if n % nb == 0:
            return nb
    return 1


@jax.jit
def conv_block_forward(x_nchw, params):
    """Equivalent of conv_block.forward (eval mode). NCHW in, NCHW out."""
    N, Cin, H, W = x_nchw.shape
    HW = H * W
    assert W + 1 <= _HALO, "halo pad too small for this W"
    # Free reshape of contiguous NCHW -> (N, Cin, H*W); no HBM transpose pass.
    x = x_nchw.reshape(N, Cin, HW).astype(jnp.float32)

    w1t, b1 = _fold_conv_bn(params["w1"], params["b1"], params["g1"],
                            params["beta1"], params["m1"], params["v1"])
    w2t, b2 = _fold_conv_bn(params["w2"], params["b2"], params["g2"],
                            params["beta2"], params["m2"], params["v2"])
    Cmid = w1t.shape[0]
    Cout = w2t.shape[0]

    nb = _pick_nb(N)
    kernel = functools.partial(_fused_conv_block_kernel, W=W)

    out_flat = pl.pallas_call(
        kernel,
        out_shape=jax.ShapeDtypeStruct((N, Cout, HW), jnp.float32),
        grid=(N // nb,),
        in_specs=[
            pl.BlockSpec((nb, Cin, HW), lambda n: (n, 0, 0)),
            pl.BlockSpec((Cmid, 9 * Cin), lambda n: (0, 0)),
            pl.BlockSpec((Cmid, 1), lambda n: (0, 0)),
            pl.BlockSpec((Cout, 9 * Cmid), lambda n: (0, 0)),
            pl.BlockSpec((Cout, 1), lambda n: (0, 0)),
        ],
        out_specs=pl.BlockSpec((nb, Cout, HW), lambda n: (n, 0, 0)),
        scratch_shapes=[
            pltpu.VMEM((Cin, _HALO + HW + _HALO), jnp.float32),   # flat halo, stage 1
            pltpu.VMEM((Cmid, _HALO + HW + _HALO), jnp.float32),  # flat halo, stage 2
            pltpu.VMEM((9 * Cin, HW), jnp.float32),               # im2col patch 1
            pltpu.VMEM((9 * Cmid, HW), jnp.float32),              # im2col patch 2
        ],
        compiler_params=pltpu.CompilerParams(
            dimension_semantics=("parallel",)),
    )(x, w1t, b1.reshape(Cmid, 1), w2t, b2.reshape(Cout, 1))

    # (N, Cout, H*W) -> (N, Cout, H, W): pure reshape, already NCHW.
    return out_flat.reshape(N, Cout, H, W)


def init_conv_block_params(key, ch_in, ch_out):
    """Deterministic synthetic parameters matching nn.Conv2d/BatchNorm2d shapes."""
    ks = jax.random.split(key, 10)
    p = {}
    # Conv weights kept in torch OIHW layout; folding/transposes happen in the wrapper.
    p["w1"] = jax.random.normal(ks[0], (ch_out, ch_in, 3, 3), jnp.float32) * 0.1
    p["b1"] = jax.random.normal(ks[1], (ch_out,), jnp.float32) * 0.1
    p["w2"] = jax.random.normal(ks[2], (ch_out, ch_out, 3, 3), jnp.float32) * 0.1
    p["b2"] = jax.random.normal(ks[3], (ch_out,), jnp.float32) * 0.1
    # BatchNorm affine params / running stats (non-trivial, deterministic).
    p["g1"] = 1.0 + 0.1 * jax.random.normal(ks[4], (ch_out,), jnp.float32)
    p["beta1"] = 0.1 * jax.random.normal(ks[5], (ch_out,), jnp.float32)
    p["m1"] = 0.1 * jax.random.normal(ks[6], (ch_out,), jnp.float32)
    p["v1"] = jnp.abs(1.0 + 0.1 * jax.random.normal(ks[7], (ch_out,), jnp.float32))
    p["g2"] = 1.0 + 0.1 * jax.random.normal(ks[8], (ch_out,), jnp.float32)
    p["beta2"] = 0.1 * jax.random.normal(ks[9], (ch_out,), jnp.float32)
    p["m2"] = jnp.zeros((ch_out,), jnp.float32)
    p["v2"] = jnp.ones((ch_out,), jnp.float32)
    return p


def _reference_forward(x_nchw, params, eps=1e-5):
    """Plain-JAX reference (lax conv, unfolded BN) for correctness checking."""
    def conv_bn_relu(x, w, b, g, beta, m, v):
        y = lax.conv_general_dilated(
            x, w, window_strides=(1, 1), padding=((1, 1), (1, 1)),
            dimension_numbers=("NCHW", "OIHW", "NCHW"))
        y = y + b.reshape(1, -1, 1, 1)
        y = (y - m.reshape(1, -1, 1, 1)) / jnp.sqrt(v.reshape(1, -1, 1, 1) + eps)
        y = y * g.reshape(1, -1, 1, 1) + beta.reshape(1, -1, 1, 1)
        return jnp.maximum(y, 0.0)

    x = x_nchw.astype(jnp.float32)
    x = conv_bn_relu(x, params["w1"], params["b1"], params["g1"],
                     params["beta1"], params["m1"], params["v1"])
    x = conv_bn_relu(x, params["w2"], params["b2"], params["g2"],
                     params["beta2"], params["m2"], params["v2"])
    return x


if __name__ == "__main__":
    key = jax.random.PRNGKey(0)
    k_x, k_p = jax.random.split(key)

    N, ch_in, H, W = 2, 4, 16, 16
    ch_out = 8

    x = jax.random.normal(k_x, (N, ch_in, H, W), jnp.float32)
    params = init_conv_block_params(k_p, ch_in, ch_out)

    out = jax.block_until_ready(conv_block_forward(x, params))
    assert out.shape == (N, ch_out, H, W), out.shape

    ref = jax.block_until_ready(_reference_forward(x, params))
    err = float(jnp.max(jnp.abs(out - ref)))
    if err > 1e-4:
        raise AssertionError(f"mismatch vs reference, max abs err = {err}")

    print("KERNEL_OK")
</pallas_src>

<mosaic_0001>
module attributes {stable_mosaic.version = 11 : i64} {
  func.func @_fused_conv_block_kernel(%arg0: i32, %arg1: memref<2x4x256xf32, #tpu.memory_space<vmem>>, %arg2: memref<8x36xf32, #tpu.memory_space<vmem>>, %arg3: memref<8x1xf32, #tpu.memory_space<vmem>>, %arg4: memref<8x72xf32, #tpu.memory_space<vmem>>, %arg5: memref<8x1xf32, #tpu.memory_space<vmem>>, %arg6: memref<2x8x256xf32, #tpu.memory_space<vmem>>, %arg7: memref<4x512xf32, #tpu.memory_space<vmem>>, %arg8: memref<8x512xf32, #tpu.memory_space<vmem>>, %arg9: memref<36x256xf32, #tpu.memory_space<vmem>>, %arg10: memref<72x256xf32, #tpu.memory_space<vmem>>) attributes {dimension_semantics = [#tpu.dimension_semantics<parallel>], iteration_bounds = array<i64: 1>, scalar_prefetch = 0 : i64, scratch_operands = 4 : i64, tpu.core_type = #tpu.core_type<tc>, window_params = [{transform_indices = @transform_0, window_bounds = array<i64: 2, 4, 256>}, {pipeline_mode = #tpu.pipeline_mode<synchronous>, transform_indices = @transform_1, window_bounds = array<i64: 8, 36>}, {pipeline_mode = #tpu.pipeline_mode<synchronous>, transform_indices = @transform_2, window_bounds = array<i64: 8, 1>}, {pipeline_mode = #tpu.pipeline_mode<synchronous>, transform_indices = @transform_3, window_bounds = array<i64: 8, 72>}, {pipeline_mode = #tpu.pipeline_mode<synchronous>, transform_indices = @transform_4, window_bounds = array<i64: 8, 1>}, {transform_indices = @transform_5, window_bounds = array<i64: 2, 8, 256>}]} {
    %cst = arith.constant 0.000000e+00 : f32
    %0 = vector.broadcast %cst : f32 to vector<4x128xf32>
    %c0 = arith.constant 0 : index
    %c0_0 = arith.constant 0 : index
    %1 = vector.load %arg7[%c0, %c0_0] : memref<4x512xf32, #tpu.memory_space<vmem>>, vector<4x128xf32>
    tpu.vector_store %arg7[%c0, %c0_0], %0 {strides = array<i32>} : memref<4x512xf32, #tpu.memory_space<vmem>>, vector<4x128xf32>,
    %c0_1 = arith.constant 0 : index
    %c384 = arith.constant 384 : index
    %2 = vector.load %arg7[%c0_1, %c384] : memref<4x512xf32, #tpu.memory_space<vmem>>, vector<4x128xf32>
    tpu.vector_store %arg7[%c0_1, %c384], %0 {strides = array<i32>} : memref<4x512xf32, #tpu.memory_space<vmem>>, vector<4x128xf32>,
    %cst_2 = arith.constant 0.000000e+00 : f32
    %3 = vector.broadcast %cst_2 : f32 to vector<8x128xf32>
    %c0_3 = arith.constant 0 : index
    %c0_4 = arith.constant 0 : index
    %4 = vector.load %arg8[%c0_3, %c0_4] : memref<8x512xf32, #tpu.memory_space<vmem>>, vector<8x128xf32>
    tpu.vector_store %arg8[%c0_3, %c0_4], %3 {strides = array<i32>} : memref<8x512xf32, #tpu.memory_space<vmem>>, vector<8x128xf32>,
    %c0_5 = arith.constant 0 : index
    %c384_6 = arith.constant 384 : index
    %5 = vector.load %arg8[%c0_5, %c384_6] : memref<8x512xf32, #tpu.memory_space<vmem>>, vector<8x128xf32>
    tpu.vector_store %arg8[%c0_5, %c384_6], %3 {strides = array<i32>} : memref<8x512xf32, #tpu.memory_space<vmem>>, vector<8x128xf32>,
    %6 = tpu.iota {dimensions = array<i32: 1>} : vector<1x256xi32>
    %c16_i32 = arith.constant 16 : i32
    %c0_i32 = arith.constant 0 : i32
    %7 = arith.cmpi eq, %c16_i32, %c0_i32 : i32
    %c1_i32 = arith.constant 1 : i32
    %8 = arith.select %7, %c1_i32, %c16_i32 : i32
    %9 = vector.broadcast %8 : i32 to vector<1x256xi32>
    %10 = arith.remsi %6, %9 : vector<1x256xi32>
    %c0_i32_7 = arith.constant 0 : i32
    %11 = vector.broadcast %c0_i32_7 : i32 to vector<1x256xi32>
    %12 = arith.cmpi ne, %10, %11 : vector<1x256xi32>
    %c0_i32_8 = arith.constant 0 : i32
    %13 = vector.broadcast %c0_i32_8 : i32 to vector<1x256xi32>
    %14 = arith.cmpi slt, %10, %13 : vector<1x256xi32>
    %c0_i32_9 = arith.constant 0 : i32
    %15 = arith.cmpi slt, %8, %c0_i32_9 : i32
    %16 = vector.broadcast %15 : i1 to vector<1x256xi1>
    %17 = vector.broadcast %16 : vector<1x256xi1> to vector<1x256xi1>
    %18 = arith.xori %14, %17 : vector<1x256xi1>
    %19 = arith.andi %18, %12 : vector<1x256xi1>
    %20 = vector.broadcast %8 : i32 to vector<1x256xi32>
    %21 = arith.addi %10, %20 : vector<1x256xi32>
    %22 = arith.select %19, %21, %10 : vector<1x256xi1>, vector<1x256xi32>
    %c15_i32 = arith.constant 15 : i32
    %23 = vector.broadcast %c15_i32 : i32 to vector<1x256xi32>
    %24 = arith.cmpi ne, %22, %23 : vector<1x256xi32>
    %c0_i32_10 = arith.constant 0 : i32
    %25 = vector.broadcast %c0_i32_10 : i32 to vector<1x256xi32>
    %26 = arith.cmpi ne, %22, %25 : vector<1x256xi32>
    %c0_11 = arith.constant 0 : index
    %c0_12 = arith.constant 0 : index
    %c0_13 = arith.constant 0 : index
    %27 = vector.load %arg1[%c0_11, %c0_12, %c0_13] : memref<2x4x256xf32, #tpu.memory_space<vmem>>, vector<1x4x256xf32>
    %28 = vector.shape_cast %27 : vector<1x4x256xf32> to vector<4x256xf32>
    %c0_14 = arith.constant 0 : index
    %c128 = arith.constant 128 : index
    %29 = vector.load %arg7[%c0_14, %c128] : memref<4x512xf32, #tpu.memory_space<vmem>>, vector<4x256xf32>
    tpu.vector_store %arg7[%c0_14, %c128], %28 {strides = array<i32>} : memref<4x512xf32, #tpu.memory_space<vmem>>, vector<4x256xf32>,
    %c0_15 = arith.constant 0 : index
    %c111 = arith.constant 111 : index
    %30 = vector.load %arg7[%c0_15, %c111] : memref<4x512xf32, #tpu.memory_space<vmem>>, vector<4x256xf32>
    %cst_16 = arith.constant 0.000000e+00 : f32
    %31 = vector.shape_cast %26 : vector<1x256xi1> to vector<1x256xi1>
    %32 = vector.broadcast %31 : vector<1x256xi1> to vector<4x256xi1>
    %33 = vector.broadcast %cst_16 : f32 to vector<4x256xf32>
    %34 = arith.select %32, %30, %33 : vector<4x256xi1>, vector<4x256xf32>
    %c0_17 = arith.constant 0 : index
    %c0_18 = arith.constant 0 : index
    %35 = vector.load %arg9[%c0_17, %c0_18] : memref<36x256xf32, #tpu.memory_space<vmem>>, vector<4x256xf32>
    tpu.vector_store %arg9[%c0_17, %c0_18], %34 {strides = array<i32>} : memref<36x256xf32, #tpu.memory_space<vmem>>, vector<4x256xf32>,
    %c0_19 = arith.constant 0 : index
    %c112 = arith.constant 112 : index
    %36 = vector.load %arg7[%c0_19, %c112] : memref<4x512xf32, #tpu.memory_space<vmem>>, vector<4x256xf32>
    %c4 = arith.constant 4 : index
    %c0_20 = arith.constant 0 : index
    %37 = vector.load %arg9[%c4, %c0_20] : memref<36x256xf32, #tpu.memory_space<vmem>>, vector<4x256xf32>
    tpu.vector_store %arg9[%c4, %c0_20], %36 {strides = array<i32>} : memref<36x256xf32, #tpu.memory_space<vmem>>, vector<4x256xf32>,
    %c0_21 = arith.constant 0 : index
    %c113 = arith.constant 113 : index
    %38 = vector.load %arg7[%c0_21, %c113] : memref<4x512xf32, #tpu.memory_space<vmem>>, vector<4x256xf32>
    %cst_22 = arith.constant 0.000000e+00 : f32
    %39 = vector.shape_cast %24 : vector<1x256xi1> to vector<1x256xi1>
    %40 = vector.broadcast %39 : vector<1x256xi1> to vector<4x256xi1>
    %41 = vector.broadcast %cst_22 : f32 to vector<4x256xf32>
    %42 = arith.select %40, %38, %41 : vector<4x256xi1>, vector<4x256xf32>
    %c8 = arith.constant 8 : index
    %c0_23 = arith.constant 0 : index
    %43 = vector.load %arg9[%c8, %c0_23] : memref<36x256xf32, #tpu.memory_space<vmem>>, vector<4x256xf32>
    tpu.vector_store %arg9[%c8, %c0_23], %42 {strides = array<i32>} : memref<36x256xf32, #tpu.memory_space<vmem>>, vector<4x256xf32>,
    %c0_24 = arith.constant 0 : index
    %c127 = arith.constant 127 : index
    %44 = vector.load %arg7[%c0_24, %c127] : memref<4x512xf32, #tpu.memory_space<vmem>>, vector<4x256xf32>
    %cst_25 = arith.constant 0.000000e+00 : f32
    %45 = vector.shape_cast %26 : vector<1x256xi1> to vector<1x256xi1>
    %46 = vector.broadcast %45 : vector<1x256xi1> to vector<4x256xi1>
    %47 = vector.broadcast %cst_25 : f32 to vector<4x256xf32>
    %48 = arith.select %46, %44, %47 : vector<4x256xi1>, vector<4x256xf32>
    %c12 = arith.constant 12 : index
    %c0_26 = arith.constant 0 : index
    %49 = vector.load %arg9[%c12, %c0_26] : memref<36x256xf32, #tpu.memory_space<vmem>>, vector<4x256xf32>
    tpu.vector_store %arg9[%c12, %c0_26], %48 {strides = array<i32>} : memref<36x256xf32, #tpu.memory_space<vmem>>, vector<4x256xf32>,
    %c0_27 = arith.constant 0 : index
    %c128_28 = arith.constant 128 : index
    %50 = vector.load %arg7[%c0_27, %c128_28] : memref<4x512xf32, #tpu.memory_space<vmem>>, vector<4x256xf32>
    %c16 = arith.constant 16 : index
    %c0_29 = arith.constant 0 : index
    %51 = vector.load %arg9[%c16, %c0_29] : memref<36x256xf32, #tpu.memory_space<vmem>>, vector<4x256xf32>
    tpu.vector_store %arg9[%c16, %c0_29], %50 {strides = array<i32>} : memref<36x256xf32, #tpu.memory_space<vmem>>, vector<4x256xf32>,
    %c0_30 = arith.constant 0 : index
    %c129 = arith.constant 129 : index
    %52 = vector.load %arg7[%c0_30, %c129] : memref<4x512xf32, #tpu.memory_space<vmem>>, vector<4x256xf32>
    %cst_31 = arith.constant 0.000000e+00 : f32
    %53 = vector.shape_cast %24 : vector<1x256xi1> to vector<1x256xi1>
    %54 = vector.broadcast %53 : vector<1x256xi1> to vector<4x256xi1>
    %55 = vector.broadcast %cst_31 : f32 to vector<4x256xf32>
    %56 = arith.select %54, %52, %55 : vector<4x256xi1>, vector<4x256xf32>
    %c20 = arith.constant 20 : index
    %c0_32 = arith.constant 0 : index
    %57 = vector.load %arg9[%c20, %c0_32] : memref<36x256xf32, #tpu.memory_space<vmem>>, vector<4x256xf32>
    tpu.vector_store %arg9[%c20, %c0_32], %56 {strides = array<i32>} : memref<36x256xf32, #tpu.memory_space<vmem>>, vector<4x256xf32>,
    %c0_33 = arith.constant 0 : index
    %c143 = arith.constant 143 : index
    %58 = vector.load %arg7[%c0_33, %c143] : memref<4x512xf32, #tpu.memory_space<vmem>>, vector<4x256xf32>
    %cst_34 = arith.constant 0.000000e+00 : f32
    %59 = vector.shape_cast %26 : vector<1x256xi1> to vector<1x256xi1>
    %60 = vector.broadcast %59 : vector<1x256xi1> to vector<4x256xi1>
    %61 = vector.broadcast %cst_34 : f32 to vector<4x256xf32>
    %62 = arith.select %60, %58, %61 : vector<4x256xi1>, vector<4x256xf32>
    %c24 = arith.constant 24 : index
    %c0_35 = arith.constant 0 : index
    %63 = vector.load %arg9[%c24, %c0_35] : memref<36x256xf32, #tpu.memory_space<vmem>>, vector<4x256xf32>
    tpu.vector_store %arg9[%c24, %c0_35], %62 {strides = array<i32>} : memref<36x256xf32, #tpu.memory_space<vmem>>, vector<4x256xf32>,
    %c0_36 = arith.constant 0 : index
    %c144 = arith.constant 144 : index
    %64 = vector.load %arg7[%c0_36, %c144] : memref<4x512xf32, #tpu.memory_space<vmem>>, vector<4x256xf32>
    %c28 = arith.constant 28 : index
    %c0_37 = arith.constant 0 : index
    %65 = vector.load %arg9[%c28, %c0_37] : memref<36x256xf32, #tpu.memory_space<vmem>>, vector<4x256xf32>
    tpu.vector_store %arg9[%c28, %c0_37], %64 {strides = array<i32>} : memref<36x256xf32, #tpu.memory_space<vmem>>, vector<4x256xf32>,
    %c0_38 = arith.constant 0 : index
    %c145 = arith.constant 145 : index
    %66 = vector.load %arg7[%c0_38, %c145] : memref<4x512xf32, #tpu.memory_space<vmem>>, vector<4x256xf32>
    %cst_39 = arith.constant 0.000000e+00 : f32
    %67 = vector.shape_cast %24 : vector<1x256xi1> to vector<1x256xi1>
    %68 = vector.broadcast %67 : vector<1x256xi1> to vector<4x256xi1>
    %69 = vector.broadcast %cst_39 : f32 to vector<4x256xf32>
    %70 = arith.select %68, %66, %69 : vector<4x256xi1>, vector<4x256xf32>
    %c32 = arith.constant 32 : index
    %c0_40 = arith.constant 0 : index
    %71 = vector.load %arg9[%c32, %c0_40] : memref<36x256xf32, #tpu.memory_space<vmem>>, vector<4x256xf32>
    tpu.vector_store %arg9[%c32, %c0_40], %70 {strides = array<i32>} : memref<36x256xf32, #tpu.memory_space<vmem>>, vector<4x256xf32>,
    %c0_41 = arith.constant 0 : index
    %c0_42 = arith.constant 0 : index
    %72 = vector.load %arg2[%c0_41, %c0_42] : memref<8x36xf32, #tpu.memory_space<vmem>>, vector<8x36xf32>
    %c0_43 = arith.constant 0 : index
    %c0_44 = arith.constant 0 : index
    %73 = vector.load %arg9[%c0_43, %c0_44] : memref<36x256xf32, #tpu.memory_space<vmem>>, vector<36x256xf32>
    %cst_45 = arith.constant dense<0.000000e+00> : vector<8x256xf32>
    %74 = tpu.matmul %72, %73, %cst_45 {dimension_numbers = #tpu.dot_dimension_numbers<[1], [0], [0], [1], [0, 0, 1, 1], [], []>} : vector<8x36xf32>, vector<36x256xf32>, vector<8x256xf32> -> vector<8x256xf32>
    %c0_46 = arith.constant 0 : index
    %c0_47 = arith.constant 0 : index
    %75 = vector.load %arg3[%c0_46, %c0_47] : memref<8x1xf32, #tpu.memory_space<vmem>>, vector<8x1xf32>
    %76 = vector.broadcast %75 : vector<8x1xf32> to vector<8x256xf32>
    %77 = arith.addf %74, %76 : vector<8x256xf32>
    %cst_48 = arith.constant 0.000000e+00 : f32
    %78 = vector.broadcast %cst_48 : f32 to vector<8x256xf32>
    %79 = arith.maximumf %77, %78 : vector<8x256xf32>
    %c0_49 = arith.constant 0 : index
    %c128_50 = arith.constant 128 : index
    %80 = vector.load %arg8[%c0_49, %c128_50] : memref<8x512xf32, #tpu.memory_space<vmem>>, vector<8x256xf32>
    tpu.vector_store %arg8[%c0_49, %c128_50], %79 {strides = array<i32>} : memref<8x512xf32, #tpu.memory_space<vmem>>, vector<8x256xf32>,
    %c0_51 = arith.constant 0 : index
    %c111_52 = arith.constant 111 : index
    %81 = vector.load %arg8[%c0_51, %c111_52] : memref<8x512xf32, #tpu.memory_space<vmem>>, vector<8x256xf32>
    %cst_53 = arith.constant 0.000000e+00 : f32
    %82 = vector.shape_cast %26 : vector<1x256xi1> to vector<1x256xi1>
    %83 = vector.broadcast %82 : vector<1x256xi1> to vector<8x256xi1>
    %84 = vector.broadcast %cst_53 : f32 to vector<8x256xf32>
    %85 = arith.select %83, %81, %84 : vector<8x256xi1>, vector<8x256xf32>
    %c0_54 = arith.constant 0 : index
    %c0_55 = arith.constant 0 : index
    %86 = vector.load %arg10[%c0_54, %c0_55] : memref<72x256xf32, #tpu.memory_space<vmem>>, vector<8x256xf32>
    tpu.vector_store %arg10[%c0_54, %c0_55], %85 {strides = array<i32>} : memref<72x256xf32, #tpu.memory_space<vmem>>, vector<8x256xf32>,
    %c0_56 = arith.constant 0 : index
    %c112_57 = arith.constant 112 : index
    %87 = vector.load %arg8[%c0_56, %c112_57] : memref<8x512xf32, #tpu.memory_space<vmem>>, vector<8x256xf32>
    %c8_58 = arith.constant 8 : index
    %c0_59 = arith.constant 0 : index
    %88 = vector.load %arg10[%c8_58, %c0_59] : memref<72x256xf32, #tpu.memory_space<vmem>>, vector<8x256xf32>
    tpu.vector_store %arg10[%c8_58, %c0_59], %87 {strides = array<i32>} : memref<72x256xf32, #tpu.memory_space<vmem>>, vector<8x256xf32>,
    %c0_60 = arith.constant 0 : index
    %c113_61 = arith.constant 113 : index
    %89 = vector.load %arg8[%c0_60, %c113_61] : memref<8x512xf32, #tpu.memory_space<vmem>>, vector<8x256xf32>
    %cst_62 = arith.constant 0.000000e+00 : f32
    %90 = vector.shape_cast %24 : vector<1x256xi1> to vector<1x256xi1>
    %91 = vector.broadcast %90 : vector<1x256xi1> to vector<8x256xi1>
    %92 = vector.broadcast %cst_62 : f32 to vector<8x256xf32>
    %93 = arith.select %91, %89, %92 : vector<8x256xi1>, vector<8x256xf32>
    %c16_63 = arith.constant 16 : index
    %c0_64 = arith.constant 0 : index
    %94 = vector.load %arg10[%c16_63, %c0_64] : memref<72x256xf32, #tpu.memory_space<vmem>>, vector<8x256xf32>
    tpu.vector_store %arg10[%c16_63, %c0_64], %93 {strides = array<i32>} : memref<72x256xf32, #tpu.memory_space<vmem>>, vector<8x256xf32>,
    %c0_65 = arith.constant 0 : index
    %c127_66 = arith.constant 127 : index
    %95 = vector.load %arg8[%c0_65, %c127_66] : memref<8x512xf32, #tpu.memory_space<vmem>>, vector<8x256xf32>
    %cst_67 = arith.constant 0.000000e+00 : f32
    %96 = vector.shape_cast %26 : vector<1x256xi1> to vector<1x256xi1>
    %97 = vector.broadcast %96 : vector<1x256xi1> to vector<8x256xi1>
    %98 = vector.broadcast %cst_67 : f32 to vector<8x256xf32>
    %99 = arith.select %97, %95, %98 : vector<8x256xi1>, vector<8x256xf32>
    %c24_68 = arith.constant 24 : index
    %c0_69 = arith.constant 0 : index
    %100 = vector.load %arg10[%c24_68, %c0_69] : memref<72x256xf32, #tpu.memory_space<vmem>>, vector<8x256xf32>
    tpu.vector_store %arg10[%c24_68, %c0_69], %99 {strides = array<i32>} : memref<72x256xf32, #tpu.memory_space<vmem>>, vector<8x256xf32>,
    %c0_70 = arith.constant 0 : index
    %c128_71 = arith.constant 128 : index
    %101 = vector.load %arg8[%c0_70, %c128_71] : memref<8x512xf32, #tpu.memory_space<vmem>>, vector<8x256xf32>
    %c32_72 = arith.constant 32 : index
    %c0_73 = arith.constant 0 : index
    %102 = vector.load %arg10[%c32_72, %c0_73] : memref<72x256xf32, #tpu.memory_space<vmem>>, vector<8x256xf32>
    tpu.vector_store %arg10[%c32_72, %c0_73], %101 {strides = array<i32>} : memref<72x256xf32, #tpu.memory_space<vmem>>, vector<8x256xf32>,
    %c0_74 = arith.constant 0 : index
    %c129_75 = arith.constant 129 : index
    %103 = vector.load %arg8[%c0_74, %c129_75] : memref<8x512xf32, #tpu.memory_space<vmem>>, vector<8x256xf32>
    %cst_76 = arith.constant 0.000000e+00 : f32
    %104 = vector.shape_cast %24 : vector<1x256xi1> to vector<1x256xi1>
    %105 = vector.broadcast %104 : vector<1x256xi1> to vector<8x256xi1>
    %106 = vector.broadcast %cst_76 : f32 to vector<8x256xf32>
    %107 = arith.select %105, %103, %106 : vector<8x256xi1>, vector<8x256xf32>
    %c40 = arith.constant 40 : index
    %c0_77 = arith.constant 0 : index
    %108 = vector.load %arg10[%c40, %c0_77] : memref<72x256xf32, #tpu.memory_space<vmem>>, vector<8x256xf32>
    tpu.vector_store %arg10[%c40, %c0_77], %107 {strides = array<i32>} : memref<72x256xf32, #tpu.memory_space<vmem>>, vector<8x256xf32>,
    %c0_78 = arith.constant 0 : index
    %c143_79 = arith.constant 143 : index
    %109 = vector.load %arg8[%c0_78, %c143_79] : memref<8x512xf32, #tpu.memory_space<vmem>>, vector<8x256xf32>
    %cst_80 = arith.constant 0.000000e+00 : f32
    %110 = vector.shape_cast %26 : vector<1x256xi1> to vector<1x256xi1>
    %111 = vector.broadcast %110 : vector<1x256xi1> to vector<8x256xi1>
    %112 = vector.broadcast %cst_80 : f32 to vector<8x256xf32>
    %113 = arith.select %111, %109, %112 : vector<8x256xi1>, vector<8x256xf32>
    %c48 = arith.constant 48 : index
    %c0_81 = arith.constant 0 : index
    %114 = vector.load %arg10[%c48, %c0_81] : memref<72x256xf32, #tpu.memory_space<vmem>>, vector<8x256xf32>
    tpu.vector_store %arg10[%c48, %c0_81], %113 {strides = array<i32>} : memref<72x256xf32, #tpu.memory_space<vmem>>, vector<8x256xf32>,
    %c0_82 = arith.constant 0 : index
    %c144_83 = arith.constant 144 : index
    %115 = vector.load %arg8[%c0_82, %c144_83] : memref<8x512xf32, #tpu.memory_space<vmem>>, vector<8x256xf32>
    %c56 = arith.constant 56 : index
    %c0_84 = arith.constant 0 : index
    %116 = vector.load %arg10[%c56, %c0_84] : memref<72x256xf32, #tpu.memory_space<vmem>>, vector<8x256xf32>
    tpu.vector_store %arg10[%c56, %c0_84], %115 {strides = array<i32>} : memref<72x256xf32, #tpu.memory_space<vmem>>, vector<8x256xf32>,
    %c0_85 = arith.constant 0 : index
    %c145_86 = arith.constant 145 : index
    %117 = vector.load %arg8[%c0_85, %c145_86] : memref<8x512xf32, #tpu.memory_space<vmem>>, vector<8x256xf32>
    %cst_87 = arith.constant 0.000000e+00 : f32
    %118 = vector.shape_cast %24 : vector<1x256xi1> to vector<1x256xi1>
    %119 = vector.broadcast %118 : vector<1x256xi1> to vector<8x256xi1>
    %120 = vector.broadcast %cst_87 : f32 to vector<8x256xf32>
    %121 = arith.select %119, %117, %120 : vector<8x256xi1>, vector<8x256xf32>
    %c64 = arith.constant 64 : index
    %c0_88 = arith.constant 0 : index
    %122 = vector.load %arg10[%c64, %c0_88] : memref<72x256xf32, #tpu.memory_space<vmem>>, vector<8x256xf32>
    tpu.vector_store %arg10[%c64, %c0_88], %121 {strides = array<i32>} : memref<72x256xf32, #tpu.memory_space<vmem>>, vector<8x256xf32>,
    %c0_89 = arith.constant 0 : index
    %c0_90 = arith.constant 0 : index
    %123 = vector.load %arg4[%c0_89, %c0_90] : memref<8x72xf32, #tpu.memory_space<vmem>>, vector<8x72xf32>
    %c0_91 = arith.constant 0 : index
    %c0_92 = arith.constant 0 : index
    %124 = vector.load %arg10[%c0_91, %c0_92] : memref<72x256xf32, #tpu.memory_space<vmem>>, vector<72x256xf32>
    %cst_93 = arith.constant dense<0.000000e+00> : vector<8x256xf32>
    %125 = tpu.matmul %123, %124, %cst_93 {dimension_numbers = #tpu.dot_dimension_numbers<[1], [0], [0], [1], [0, 0, 1, 1], [], []>} : vector<8x72xf32>, vector<72x256xf32>, vector<8x256xf32> -> vector<8x256xf32>
    %c0_94 = arith.constant 0 : index
    %c0_95 = arith.constant 0 : index
    %126 = vector.load %arg5[%c0_94, %c0_95] : memref<8x1xf32, #tpu.memory_space<vmem>>, vector<8x1xf32>
    %127 = vector.broadcast %126 : vector<8x1xf32> to vector<8x256xf32>
    %128 = arith.addf %125, %127 : vector<8x256xf32>
    %cst_96 = arith.constant 0.000000e+00 : f32
    %129 = vector.broadcast %cst_96 : f32 to vector<8x256xf32>
    %130 = arith.maximumf %128, %129 : vector<8x256xf32>
    %c0_97 = arith.constant 0 : index
    %c0_98 = arith.constant 0 : index
    %c0_99 = arith.constant 0 : index
    %131 = vector.load %arg6[%c0_97, %c0_98, %c0_99] : memref<2x8x256xf32, #tpu.memory_space<vmem>>, vector<1x8x256xf32>
    %132 = vector.shape_cast %131 : vector<1x8x256xf32> to vector<8x256xf32>
    %133 = vector.shape_cast %130 : vector<8x256xf32> to vector<1x8x256xf32>
    tpu.vector_store %arg6[%c0_97, %c0_98, %c0_99], %133 {strides = array<i32>} : memref<2x8x256xf32, #tpu.memory_space<vmem>>, vector<1x8x256xf32>,
    %c1 = arith.constant 1 : index
    %c0_100 = arith.constant 0 : index
    %c0_101 = arith.constant 0 : index
    %134 = vector.load %arg1[%c1, %c0_100, %c0_101] : memref<2x4x256xf32, #tpu.memory_space<vmem>>, vector<1x4x256xf32>
    %135 = vector.shape_cast %134 : vector<1x4x256xf32> to vector<4x256xf32>
    %c0_102 = arith.constant 0 : index
    %c128_103 = arith.constant 128 : index
    %136 = vector.load %arg7[%c0_102, %c128_103] : memref<4x512xf32, #tpu.memory_space<vmem>>, vector<4x256xf32>
    tpu.vector_store %arg7[%c0_102, %c128_103], %135 {strides = array<i32>} : memref<4x512xf32, #tpu.memory_space<vmem>>, vector<4x256xf32>,
    %c0_104 = arith.constant 0 : index
    %c111_105 = arith.constant 111 : index
    %137 = vector.load %arg7[%c0_104, %c111_105] : memref<4x512xf32, #tpu.memory_space<vmem>>, vector<4x256xf32>
    %cst_106 = arith.constant 0.000000e+00 : f32
    %138 = vector.shape_cast %26 : vector<1x256xi1> to vector<1x256xi1>
    %139 = vector.broadcast %138 : vector<1x256xi1> to vector<4x256xi1>
    %140 = vector.broadcast %cst_106 : f32 to vector<4x256xf32>
    %141 = arith.select %139, %137, %140 : vector<4x256xi1>, vector<4x256xf32>
    %c0_107 = arith.constant 0 : index
    %c0_108 = arith.constant 0 : index
    %142 = vector.load %arg9[%c0_107, %c0_108] : memref<36x256xf32, #tpu.memory_space<vmem>>, vector<4x256xf32>
    tpu.vector_store %arg9[%c0_107, %c0_108], %141 {strides = array<i32>} : memref<36x256xf32, #tpu.memory_space<vmem>>, vector<4x256xf32>,
    %c0_109 = arith.constant 0 : index
    %c112_110 = arith.constant 112 : index
    %143 = vector.load %arg7[%c0_109, %c112_110] : memref<4x512xf32, #tpu.memory_space<vmem>>, vector<4x256xf32>
    %c4_111 = arith.constant 4 : index
    %c0_112 = arith.constant 0 : index
    %144 = vector.load %arg9[%c4_111, %c0_112] : memref<36x256xf32, #tpu.memory_space<vmem>>, vector<4x256xf32>
    tpu.vector_store %arg9[%c4_111, %c0_112], %143 {strides = array<i32>} : memref<36x256xf32, #tpu.memory_space<vmem>>, vector<4x256xf32>,
    %c0_113 = arith.constant 0 : index
    %c113_114 = arith.constant 113 : index
    %145 = vector.load %arg7[%c0_113, %c113_114] : memref<4x512xf32, #tpu.memory_space<vmem>>, vector<4x256xf32>
    %cst_115 = arith.constant 0.000000e+00 : f32
    %146 = vector.shape_cast %24 : vector<1x256xi1> to vector<1x256xi1>
    %147 = vector.broadcast %146 : vector<1x256xi1> to vector<4x256xi1>
    %148 = vector.broadcast %cst_115 : f32 to vector<4x256xf32>
    %149 = arith.select %147, %145, %148 : vector<4x256xi1>, vector<4x256xf32>
    %c8_116 = arith.constant 8 : index
    %c0_117 = arith.constant 0 : index
    %150 = vector.load %arg9[%c8_116, %c0_117] : memref<36x256xf32, #tpu.memory_space<vmem>>, vector<4x256xf32>
    tpu.vector_store %arg9[%c8_116, %c0_117], %149 {strides = array<i32>} : memref<36x256xf32, #tpu.memory_space<vmem>>, vector<4x256xf32>,
    %c0_118 = arith.constant 0 : index
    %c127_119 = arith.constant 127 : index
    %151 = vector.load %arg7[%c0_118, %c127_119] : memref<4x512xf32, #tpu.memory_space<vmem>>, vector<4x256xf32>
    %cst_120 = arith.constant 0.000000e+00 : f32
    %152 = vector.shape_cast %26 : vector<1x256xi1> to vector<1x256xi1>
    %153 = vector.broadcast %152 : vector<1x256xi1> to vector<4x256xi1>
    %154 = vector.broadcast %cst_120 : f32 to vector<4x256xf32>
    %155 = arith.select %153, %151, %154 : vector<4x256xi1>, vector<4x256xf32>
    %c12_121 = arith.constant 12 : index
    %c0_122 = arith.constant 0 : index
    %156 = vector.load %arg9[%c12_121, %c0_122] : memref<36x256xf32, #tpu.memory_space<vmem>>, vector<4x256xf32>
    tpu.vector_store %arg9[%c12_121, %c0_122], %155 {strides = array<i32>} : memref<36x256xf32, #tpu.memory_space<vmem>>, vector<4x256xf32>,
    %c0_123 = arith.constant 0 : index
    %c128_124 = arith.constant 128 : index
    %157 = vector.load %arg7[%c0_123, %c128_124] : memref<4x512xf32, #tpu.memory_space<vmem>>, vector<4x256xf32>
    %c16_125 = arith.constant 16 : index
    %c0_126 = arith.constant 0 : index
    %158 = vector.load %arg9[%c16_125, %c0_126] : memref<36x256xf32, #tpu.memory_space<vmem>>, vector<4x256xf32>
    tpu.vector_store %arg9[%c16_125, %c0_126], %157 {strides = array<i32>} : memref<36x256xf32, #tpu.memory_space<vmem>>, vector<4x256xf32>,
    %c0_127 = arith.constant 0 : index
    %c129_128 = arith.constant 129 : index
    %159 = vector.load %arg7[%c0_127, %c129_128] : memref<4x512xf32, #tpu.memory_space<vmem>>, vector<4x256xf32>
    %cst_129 = arith.constant 0.000000e+00 : f32
    %160 = vector.shape_cast %24 : vector<1x256xi1> to vector<1x256xi1>
    %161 = vector.broadcast %160 : vector<1x256xi1> to vector<4x256xi1>
    %162 = vector.broadcast %cst_129 : f32 to vector<4x256xf32>
    %163 = arith.select %161, %159, %162 : vector<4x256xi1>, vector<4x256xf32>
    %c20_130 = arith.constant 20 : index
    %c0_131 = arith.constant 0 : index
    %164 = vector.load %arg9[%c20_130, %c0_131] : memref<36x256xf32, #tpu.memory_space<vmem>>, vector<4x256xf32>
    tpu.vector_store %arg9[%c20_130, %c0_131], %163 {strides = array<i32>} : memref<36x256xf32, #tpu.memory_space<vmem>>, vector<4x256xf32>,
    %c0_132 = arith.constant 0 : index
    %c143_133 = arith.constant 143 : index
    %165 = vector.load %arg7[%c0_132, %c143_133] : memref<4x512xf32, #tpu.memory_space<vmem>>, vector<4x256xf32>
    %cst_134 = arith.constant 0.000000e+00 : f32
    %166 = vector.shape_cast %26 : vector<1x256xi1> to vector<1x256xi1>
    %167 = vector.broadcast %166 : vector<1x256xi1> to vector<4x256xi1>
    %168 = vector.broadcast %cst_134 : f32 to vector<4x256xf32>
    %169 = arith.select %167, %165, %168 : vector<4x256xi1>, vector<4x256xf32>
    %c24_135 = arith.constant 24 : index
    %c0_136 = arith.constant 0 : index
    %170 = vector.load %arg9[%c24_135, %c0_136] : memref<36x256xf32, #tpu.memory_space<vmem>>, vector<4x256xf32>
    tpu.vector_store %arg9[%c24_135, %c0_136], %169 {strides = array<i32>} : memref<36x256xf32, #tpu.memory_space<vmem>>, vector<4x256xf32>,
    %c0_137 = arith.constant 0 : index
    %c144_138 = arith.constant 144 : index
    %171 = vector.load %arg7[%c0_137, %c144_138] : memref<4x512xf32, #tpu.memory_space<vmem>>, vector<4x256xf32>
    %c28_139 = arith.constant 28 : index
    %c0_140 = arith.constant 0 : index
    %172 = vector.load %arg9[%c28_139, %c0_140] : memref<36x256xf32, #tpu.memory_space<vmem>>, vector<4x256xf32>
    tpu.vector_store %arg9[%c28_139, %c0_140], %171 {strides = array<i32>} : memref<36x256xf32, #tpu.memory_space<vmem>>, vector<4x256xf32>,
    %c0_141 = arith.constant 0 : index
    %c145_142 = arith.constant 145 : index
    %173 = vector.load %arg7[%c0_141, %c145_142] : memref<4x512xf32, #tpu.memory_space<vmem>>, vector<4x256xf32>
    %cst_143 = arith.constant 0.000000e+00 : f32
    %174 = vector.shape_cast %24 : vector<1x256xi1> to vector<1x256xi1>
    %175 = vector.broadcast %174 : vector<1x256xi1> to vector<4x256xi1>
    %176 = vector.broadcast %cst_143 : f32 to vector<4x256xf32>
    %177 = arith.select %175, %173, %176 : vector<4x256xi1>, vector<4x256xf32>
    %c32_144 = arith.constant 32 : index
    %c0_145 = arith.constant 0 : index
    %178 = vector.load %arg9[%c32_144, %c0_145] : memref<36x256xf32, #tpu.memory_space<vmem>>, vector<4x256xf32>
    tpu.vector_store %arg9[%c32_144, %c0_145], %177 {strides = array<i32>} : memref<36x256xf32, #tpu.memory_space<vmem>>, vector<4x256xf32>,
    %c0_146 = arith.constant 0 : index
    %c0_147 = arith.constant 0 : index
    %179 = vector.load %arg2[%c0_146, %c0_147] : memref<8x36xf32, #tpu.memory_space<vmem>>, vector<8x36xf32>
    %c0_148 = arith.constant 0 : index
    %c0_149 = arith.constant 0 : index
    %180 = vector.load %arg9[%c0_148, %c0_149] : memref<36x256xf32, #tpu.memory_space<vmem>>, vector<36x256xf32>
    %cst_150 = arith.constant dense<0.000000e+00> : vector<8x256xf32>
    %181 = tpu.matmul %179, %180, %cst_150 {dimension_numbers = #tpu.dot_dimension_numbers<[1], [0], [0], [1], [0, 0, 1, 1], [], []>} : vector<8x36xf32>, vector<36x256xf32>, vector<8x256xf32> -> vector<8x256xf32>
    %c0_151 = arith.constant 0 : index
    %c0_152 = arith.constant 0 : index
    %182 = vector.load %arg3[%c0_151, %c0_152] : memref<8x1xf32, #tpu.memory_space<vmem>>, vector<8x1xf32>
    %183 = vector.broadcast %182 : vector<8x1xf32> to vector<8x256xf32>
    %184 = arith.addf %181, %183 : vector<8x256xf32>
    %cst_153 = arith.constant 0.000000e+00 : f32
    %185 = vector.broadcast %cst_153 : f32 to vector<8x256xf32>
    %186 = arith.maximumf %184, %185 : vector<8x256xf32>
    %c0_154 = arith.constant 0 : index
    %c128_155 = arith.constant 128 : index
    %187 = vector.load %arg8[%c0_154, %c128_155] : memref<8x512xf32, #tpu.memory_space<vmem>>, vector<8x256xf32>
    tpu.vector_store %arg8[%c0_154, %c128_155], %186 {strides = array<i32>} : memref<8x512xf32, #tpu.memory_space<vmem>>, vector<8x256xf32>,
    %c0_156 = arith.constant 0 : index
    %c111_157 = arith.constant 111 : index
    %188 = vector.load %arg8[%c0_156, %c111_157] : memref<8x512xf32, #tpu.memory_space<vmem>>, vector<8x256xf32>
    %cst_158 = arith.constant 0.000000e+00 : f32
    %189 = vector.shape_cast %26 : vector<1x256xi1> to vector<1x256xi1>
    %190 = vector.broadcast %189 : vector<1x256xi1> to vector<8x256xi1>
    %191 = vector.broadcast %cst_158 : f32 to vector<8x256xf32>
    %192 = arith.select %190, %188, %191 : vector<8x256xi1>, vector<8x256xf32>
    %c0_159 = arith.constant 0 : index
    %c0_160 = arith.constant 0 : index
    %193 = vector.load %arg10[%c0_159, %c0_160] : memref<72x256xf32, #tpu.memory_space<vmem>>, vector<8x256xf32>
    tpu.vector_store %arg10[%c0_159, %c0_160], %192 {strides = array<i32>} : memref<72x256xf32, #tpu.memory_space<vmem>>, vector<8x256xf32>,
    %c0_161 = arith.constant 0 : index
    %c112_162 = arith.constant 112 : index
    %194 = vector.load %arg8[%c0_161, %c112_162] : memref<8x512xf32, #tpu.memory_space<vmem>>, vector<8x256xf32>
    %c8_163 = arith.constant 8 : index
    %c0_164 = arith.constant 0 : index
    %195 = vector.load %arg10[%c8_163, %c0_164] : memref<72x256xf32, #tpu.memory_space<vmem>>, vector<8x256xf32>
    tpu.vector_store %arg10[%c8_163, %c0_164], %194 {strides = array<i32>} : memref<72x256xf32, #tpu.memory_space<vmem>>, vector<8x256xf32>,
    %c0_165 = arith.constant 0 : index
    %c113_166 = arith.constant 113 : index
    %196 = vector.load %arg8[%c0_165, %c113_166] : memref<8x512xf32, #tpu.memory_space<vmem>>, vector<8x256xf32>
    %cst_167 = arith.constant 0.000000e+00 : f32
    %197 = vector.shape_cast %24 : vector<1x256xi1> to vector<1x256xi1>
    %198 = vector.broadcast %197 : vector<1x256xi1> to vector<8x256xi1>
    %199 = vector.broadcast %cst_167 : f32 to vector<8x256xf32>
    %200 = arith.select %198, %196, %199 : vector<8x256xi1>, vector<8x256xf32>
    %c16_168 = arith.constant 16 : index
    %c0_169 = arith.constant 0 : index
    %201 = vector.load %arg10[%c16_168, %c0_169] : memref<72x256xf32, #tpu.memory_space<vmem>>, vector<8x256xf32>
    tpu.vector_store %arg10[%c16_168, %c0_169], %200 {strides = array<i32>} : memref<72x256xf32, #tpu.memory_space<vmem>>, vector<8x256xf32>,
    %c0_170 = arith.constant 0 : index
    %c127_171 = arith.constant 127 : index
    %202 = vector.load %arg8[%c0_170, %c127_171] : memref<8x512xf32, #tpu.memory_space<vmem>>, vector<8x256xf32>
    %cst_172 = arith.constant 0.000000e+00 : f32
    %203 = vector.shape_cast %26 : vector<1x256xi1> to vector<1x256xi1>
    %204 = vector.broadcast %203 : vector<1x256xi1> to vector<8x256xi1>
    %205 = vector.broadcast %cst_172 : f32 to vector<8x256xf32>
    %206 = arith.select %204, %202, %205 : vector<8x256xi1>, vector<8x256xf32>
    %c24_173 = arith.constant 24 : index
    %c0_174 = arith.constant 0 : index
    %207 = vector.load %arg10[%c24_173, %c0_174] : memref<72x256xf32, #tpu.memory_space<vmem>>, vector<8x256xf32>
    tpu.vector_store %arg10[%c24_173, %c0_174], %206 {strides = array<i32>} : memref<72x256xf32, #tpu.memory_space<vmem>>, vector<8x256xf32>,
    %c0_175 = arith.constant 0 : index
    %c128_176 = arith.constant 128 : index
    %208 = vector.load %arg8[%c0_175, %c128_176] : memref<8x512xf32, #tpu.memory_space<vmem>>, vector<8x256xf32>
    %c32_177 = arith.constant 32 : index
    %c0_178 = arith.constant 0 : index
    %209 = vector.load %arg10[%c32_177, %c0_178] : memref<72x256xf32, #tpu.memory_space<vmem>>, vector<8x256xf32>
    tpu.vector_store %arg10[%c32_177, %c0_178], %208 {strides = array<i32>} : memref<72x256xf32, #tpu.memory_space<vmem>>, vector<8x256xf32>,
    %c0_179 = arith.constant 0 : index
    %c129_180 = arith.constant 129 : index
    %210 = vector.load %arg8[%c0_179, %c129_180] : memref<8x512xf32, #tpu.memory_space<vmem>>, vector<8x256xf32>
    %cst_181 = arith.constant 0.000000e+00 : f32
    %211 = vector.shape_cast %24 : vector<1x256xi1> to vector<1x256xi1>
    %212 = vector.broadcast %211 : vector<1x256xi1> to vector<8x256xi1>
    %213 = vector.broadcast %cst_181 : f32 to vector<8x256xf32>
    %214 = arith.select %212, %210, %213 : vector<8x256xi1>, vector<8x256xf32>
    %c40_182 = arith.constant 40 : index
    %c0_183 = arith.constant 0 : index
    %215 = vector.load %arg10[%c40_182, %c0_183] : memref<72x256xf32, #tpu.memory_space<vmem>>, vector<8x256xf32>
    tpu.vector_store %arg10[%c40_182, %c0_183], %214 {strides = array<i32>} : memref<72x256xf32, #tpu.memory_space<vmem>>, vector<8x256xf32>,
    %c0_184 = arith.constant 0 : index
    %c143_185 = arith.constant 143 : index
    %216 = vector.load %arg8[%c0_184, %c143_185] : memref<8x512xf32, #tpu.memory_space<vmem>>, vector<8x256xf32>
    %cst_186 = arith.constant 0.000000e+00 : f32
    %217 = vector.shape_cast %26 : vector<1x256xi1> to vector<1x256xi1>
    %218 = vector.broadcast %217 : vector<1x256xi1> to vector<8x256xi1>
    %219 = vector.broadcast %cst_186 : f32 to vector<8x256xf32>
    %220 = arith.select %218, %216, %219 : vector<8x256xi1>, vector<8x256xf32>
    %c48_187 = arith.constant 48 : index
    %c0_188 = arith.constant 0 : index
    %221 = vector.load %arg10[%c48_187, %c0_188] : memref<72x256xf32, #tpu.memory_space<vmem>>, vector<8x256xf32>
    tpu.vector_store %arg10[%c48_187, %c0_188], %220 {strides = array<i32>} : memref<72x256xf32, #tpu.memory_space<vmem>>, vector<8x256xf32>,
    %c0_189 = arith.constant 0 : index
    %c144_190 = arith.constant 144 : index
    %222 = vector.load %arg8[%c0_189, %c144_190] : memref<8x512xf32, #tpu.memory_space<vmem>>, vector<8x256xf32>
    %c56_191 = arith.constant 56 : index
    %c0_192 = arith.constant 0 : index
    %223 = vector.load %arg10[%c56_191, %c0_192] : memref<72x256xf32, #tpu.memory_space<vmem>>, vector<8x256xf32>
    tpu.vector_store %arg10[%c56_191, %c0_192], %222 {strides = array<i32>} : memref<72x256xf32, #tpu.memory_space<vmem>>, vector<8x256xf32>,
    %c0_193 = arith.constant 0 : index
    %c145_194 = arith.constant 145 : index
    %224 = vector.load %arg8[%c0_193, %c145_194] : memref<8x512xf32, #tpu.memory_space<vmem>>, vector<8x256xf32>
    %cst_195 = arith.constant 0.000000e+00 : f32
    %225 = vector.shape_cast %24 : vector<1x256xi1> to vector<1x256xi1>
    %226 = vector.broadcast %225 : vector<1x256xi1> to vector<8x256xi1>
    %227 = vector.broadcast %cst_195 : f32 to vector<8x256xf32>
    %228 = arith.select %226, %224, %227 : vector<8x256xi1>, vector<8x256xf32>
    %c64_196 = arith.constant 64 : index
    %c0_197 = arith.constant 0 : index
    %229 = vector.load %arg10[%c64_196, %c0_197] : memref<72x256xf32, #tpu.memory_space<vmem>>, vector<8x256xf32>
    tpu.vector_store %arg10[%c64_196, %c0_197], %228 {strides = array<i32>} : memref<72x256xf32, #tpu.memory_space<vmem>>, vector<8x256xf32>,
    %c0_198 = arith.constant 0 : index
    %c0_199 = arith.constant 0 : index
    %230 = vector.load %arg4[%c0_198, %c0_199] : memref<8x72xf32, #tpu.memory_space<vmem>>, vector<8x72xf32>
    %c0_200 = arith.constant 0 : index
    %c0_201 = arith.constant 0 : index
    %231 = vector.load %arg10[%c0_200, %c0_201] : memref<72x256xf32, #tpu.memory_space<vmem>>, vector<72x256xf32>
    %cst_202 = arith.constant dense<0.000000e+00> : vector<8x256xf32>
    %232 = tpu.matmul %230, %231, %cst_202 {dimension_numbers = #tpu.dot_dimension_numbers<[1], [0], [0], [1], [0, 0, 1, 1], [], []>} : vector<8x72xf32>, vector<72x256xf32>, vector<8x256xf32> -> vector<8x256xf32>
    %c0_203 = arith.constant 0 : index
    %c0_204 = arith.constant 0 : index
    %233 = vector.load %arg5[%c0_203, %c0_204] : memref<8x1xf32, #tpu.memory_space<vmem>>, vector<8x1xf32>
    %234 = vector.broadcast %233 : vector<8x1xf32> to vector<8x256xf32>
    %235 = arith.addf %232, %234 : vector<8x256xf32>
    %cst_205 = arith.constant 0.000000e+00 : f32
    %236 = vector.broadcast %cst_205 : f32 to vector<8x256xf32>
    %237 = arith.maximumf %235, %236 : vector<8x256xf32>
    %c1_206 = arith.constant 1 : index
    %c0_207 = arith.constant 0 : index
    %c0_208 = arith.constant 0 : index
    %238 = vector.load %arg6[%c1_206, %c0_207, %c0_208] : memref<2x8x256xf32, #tpu.memory_space<vmem>>, vector<1x8x256xf32>
    %239 = vector.shape_cast %238 : vector<1x8x256xf32> to vector<8x256xf32>
    %240 = vector.shape_cast %237 : vector<8x256xf32> to vector<1x8x256xf32>
    tpu.vector_store %arg6[%c1_206, %c0_207, %c0_208], %240 {strides = array<i32>} : memref<2x8x256xf32, #tpu.memory_space<vmem>>, vector<1x8x256xf32>,
    return
  }
  func.func @transform_0(%arg0: i32) -> (i32, i32, i32) {
    %c0_i32 = arith.constant 0 : i32
    %c0_i32_0 = arith.constant 0 : i32
    %c0_i32_1 = arith.constant 0 : i32
    return %arg0, %c0_i32, %c0_i32_0 : i32, i32, i32
  }
  func.func @transform_1(%arg0: i32) -> (i32, i32) {
    %c0_i32 = arith.constant 0 : i32
    %c0_i32_0 = arith.constant 0 : i32
    %c0_i32_1 = arith.constant 0 : i32
    return %c0_i32, %c0_i32_0 : i32, i32
  }
  func.func @transform_2(%arg0: i32) -> (i32, i32) {
    %c0_i32 = arith.constant 0 : i32
    %c0_i32_0 = arith.constant 0 : i32
    %c0_i32_1 = arith.constant 0 : i32
    return %c0_i32, %c0_i32_0 : i32, i32
  }
  func.func @transform_3(%arg0: i32) -> (i32, i32) {
    %c0_i32 = arith.constant 0 : i32
    %c0_i32_0 = arith.constant 0 : i32
    %c0_i32_1 = arith.constant 0 : i32
    return %c0_i32, %c0_i32_0 : i32, i32
  }
  func.func @transform_4(%arg0: i32) -> (i32, i32) {
    %c0_i32 = arith.constant 0 : i32
    %c0_i32_0 = arith.constant 0 : i32
    %c0_i32_1 = arith.constant 0 : i32
    return %c0_i32, %c0_i32_0 : i32, i32
  }
  func.func @transform_5(%arg0: i32) -> (i32, i32, i32) {
    %c0_i32 = arith.constant 0 : i32
    %c0_i32_0 = arith.constant 0 : i32
    %c0_i32_1 = arith.constant 0 : i32
    return %arg0, %c0_i32, %c0_i32_0 : i32, i32, i32
  }
}

</mosaic_0001>

<bundles_post_ra>
// kernel: conv_block_forward.1
= control target key start
LH: loop header
LB: loop body
LE: loop exit
PB: predicated region body
PF: predicated region fallthrough
CT: control target
= control target key end

     0   :  { %v1357_v1 = vmov 0.0   ;;  %s1358_s22 = smov 1   ;;  %s1359_s23 = smov 17   ;;  %v1366_v29 = vmov 0   ;;  %v24_v31 = vlaneseq  ;;  %vm1816_vm0 = vcmask 138240   ;;  %s1810_s0 = inlined_call_operand.vmem [shape: f32[2,4,256], index: 0, kind: input, shape index: {}]   ;;  %s1811_s2 = inlined_call_operand.vmem [shape: f32[8,1], index: 2, kind: input, shape index: {}]   ;;  %s1812_s1 = inlined_call_operand.vmem [shape: f32[8,36], index: 1, kind: input, shape index: {}]   ;;  %s1813_s4 = inlined_call_operand.vmem [shape: f32[8,1], index: 4, kind: input, shape index: {}]   ;;  %s1814_s3 = inlined_call_operand.vmem [shape: f32[8,72], index: 3, kind: input, shape index: {}]   ;;  %s1815_s5 = inlined_call_operand.vmem [shape: f32[2,8,256], index: 5, kind: output, shape index: {}]  }
   0x1   :  { %v55_v0 = vld [vmem:[%s1810_s0] sm:$0xff]  ;;  %20 = vst [vmem:[#allocation2] sm:$0xf] %v1357_v1  ;;  %21 = vst [vmem:[#allocation2 + $0xc] sm:$0xf] %v1357_v1  ;;  %333 = vmatprep.mubr.f32.mxu0 %v1357_v1  ;;  %597 = vmatprep.mubr.f32.mxu1 %v1357_v1  ;;  %v1408_v3 = vld [vmem:[%s1810_s0 + $0x8] sm:$0xff] }
   0x2   :  { %56 = vst [vmem:[#allocation2 + $0x4] sm:$0xff] %v55_v0  ;;  %154 = vst [vmem:[#allocation4 + $0x20] sm:$0xf] %v55_v0  ;;  %v160_v2 = vcombine.high %v55_v0, %v55_v0  ;;  %s1360_s0 = smov 15   ;;  %s1361_s24 = smov 16   ;;  %v206_v14 = vcombine.low %v55_v0, %v55_v0  ;;  %v1449_v23 = vcombine.high %v1408_v3, %v1408_v3  ;;  %1258 = vset.pattern.permute.xlu0 %v1366_v29  ;;  %v252_v30 = vld [vmem:[%s1811_s2] sm:$0xff] }
   0x3   :  { %s1362_s25 = smov 127   ;;  %s1363_s26 = smov 113   ;;  %v746_v27 = vcombine.low %v1408_v3, %v1408_v3  ;;  %1259 = vset.pattern.permute.xlu1 %v1366_v29  ;;  %v25_v32 = vand.u32 127, %v24_v31  ;;  %vm1818_vm3 = vcmask 7168   ;;  %vm115_vm4 = vcmask 121856  }
   0x4   :  { %155 = vst [vmem:[#allocation4 + $0x28] sm:$0xf] %v160_v2  ;;  %s1364_s27 = smov 112   ;;  %s1365_s28 = smov 111   ;;  %vm93_vm6 = vcmask 130048   ;;  %vm167_vm8 = vcmask 1039360  }
   0x5   :  { %v26_v33 = vadd.s32 128, %v25_v32  ;;  %v31_v36 = vand.u32 15, %v25_v32  ;;  %vm1819_vm9 = vcmask 924672   ;;  %vm214_vm10 = vcmask 916480  }
   0x6   :  { %vm232_vm11 = vcmask 908288   ;;  %vm262_vm12 = vcmask 1043456   ;;  %vm258_vm13 = vcmask 293888   ;;  %vm1367_vm14 = vmmov 1  }
   0x7   :  { %v38_v37 = vand.u32 15, %v26_v33  ;;  %vm1477_vm1 = vcmp.ne.s32.totalorder %v31_v36, 0  ;;  %vm1505_vm7 = vcmp.ne.s32.totalorder %v31_v36, 15 }
   0x8   :  { %v157_v11 = vld [vmem:[#allocation2 + $0xc] sm:$0xf] }
   0x9   :  { %v125_v4 = vld [vmem:[#allocation2 + $0x8] sm:$0xf]  ;;  %v124_v5 = vld [vmem:[#allocation2] sm:$0xff]  ;;  %v183_v12 = vld [vmem:[#allocation2 + $0xc] sm:$0xf]  ;;  %vm1481_vm2 = vcmp.ne.s32.totalorder %v38_v37, 0 }
   0xa   :  { %v58_v6 = vld [vmem:[#allocation2 + $0x8] sm:$0xf]  ;;  %133 = vrot.lane.b32.xlu0 %v125_v4, %s1358_s22  ;;  %129 = vrot.lane.b32.xlu1 %v124_v5, %s1358_s22  ;;  %v65_v9 = vcombine.high %v124_v5, %v124_v5  ;;  %v85_v10 = vcombine.low %v124_v5, %v124_v5  ;;  %v1349_v13 = vld [vmem:[#allocation2 + $0xc] ss:$0 sps:$4 sm:$0xff]   ;;  %vm1491_vm5 = vcmp.ne.s32.totalorder %v38_v37, 15  ;;  %vm1660_vm15 = vmpackc.low %vm1367_vm14, %vm1481_vm2 }
   0xb   :  { %v101_v7 = vld [vmem:[#allocation2 + $0x8] sm:$0xf]  ;;  %v222_v15 = vld [vmem:[#allocation2 + $0xc] sm:$0xf] }
   0xc   :  { %v1346_v8 = vld [vmem:[#allocation2 + $0x8] ss:$0 sps:$4 sm:$0xff]   ;;  %v699_v24 = vld [vmem:[#allocation2 + $0xc] sm:$0xf] }
   0xd   :  { %610 = vst [vmem:[#allocation2 + $0x4] sm:$0xff] %v1408_v3  ;;  %v724_v25 = vld [vmem:[#allocation2 + $0xc] sm:$0xf] }
   0xe   :  { %70 = vrot.lane.b32.xlu0 %v58_v6, %s1359_s23  ;;  %66 = vrot.lane.b32.xlu1 %v124_v5, %s1359_s23  ;;  %v1356_v26 = vld [vmem:[#allocation2 + $0xc] ss:$0 sps:$4 sm:$0xff]  }
   0xf   :  { %v761_v28 = vld [vmem:[#allocation2 + $0xc] sm:$0xf] }
  0x12   :  { %113 = vrot.lane.b32.xlu0 %v101_v7, %s1360_s0  ;;  %68 = vrot.lane.b32.xlu1 %v65_v9, %s1359_s23 }
  0x14   :  { %v667_v16 = vld [vmem:[#allocation2] sm:$0xff]  ;;  %v668_v18 = vld [vmem:[#allocation2 + $0x8] sm:$0xf] }
  0x15   :  { %v671_v17 = vcombine.high %v667_v16, %v667_v16  ;;  %v612_v19 = vld [vmem:[#allocation2 + $0x8] sm:$0xf]  ;;  %v634_v22 = vcombine.low %v667_v16, %v667_v16 }
  0x16   :  { %131 = vrot.lane.b32.xlu0 %v65_v9, %s1358_s22  ;;  %111 = vrot.lane.b32.xlu1 %v65_v9, %s1360_s0  ;;  %v649_v20 = vld [vmem:[#allocation2 + $0x8] sm:$0xf] }
  0x17   :  { %v1353_v21 = vld [vmem:[#allocation2 + $0x8] ss:$0 sps:$4 sm:$0xff]  }
  0x1a   :  { %89 = vrot.lane.b32.xlu0 %v124_v5, %s1361_s24  ;;  %91 = vrot.lane.b32.xlu1 %v1346_v8, %s1361_s24 }
  0x1e   :  { %109 = vrot.lane.b32.xlu0 %v124_v5, %s1360_s0  ;;  %87 = vrot.lane.b32.xlu1 %v85_v10, %s1361_s24 }
  0x22   :  { %163 = vrot.lane.b32.xlu0 %v160_v2, %s1362_s25  ;;  %165 = vrot.lane.b32.xlu1 %v157_v11, %s1362_s25 }
  0x26   :  { %161 = vrot.lane.b32.xlu0 %v55_v0, %s1362_s25  ;;  %189 = vrot.lane.b32.xlu1 %v160_v2, %s1363_s26 }
  0x2a   :  { %191 = vrot.lane.b32.xlu0 %v183_v12, %s1363_s26  ;;  %187 = vrot.lane.b32.xlu1 %v55_v0, %s1363_s26 }
  0x2e   :  { %210 = vrot.lane.b32.xlu0 %v55_v0, %s1364_s27  ;;  %212 = vrot.lane.b32.xlu1 %v1349_v13, %s1364_s27 }
  0x32   :  { %208 = vrot.lane.b32.xlu0 %v206_v14, %s1364_s27  ;;  %228 = vrot.lane.b32.xlu1 %v160_v2, %s1365_s28 }
  0x36   :  { %230 = vrot.lane.b32.xlu0 %v222_v15, %s1365_s28  ;;  %226 = vrot.lane.b32.xlu1 %v55_v0, %s1365_s28 }
  0x3a   :  { %674 = vrot.lane.b32.xlu0 %v671_v17, %s1358_s22  ;;  %676 = vrot.lane.b32.xlu1 %v668_v18, %s1358_s22 }
  0x3e   :  { %672 = vrot.lane.b32.xlu0 %v667_v16, %s1358_s22  ;;  %618 = vrot.lane.b32.xlu1 %v671_v17, %s1359_s23 }
  0x42   :  { %620 = vrot.lane.b32.xlu0 %v612_v19, %s1359_s23  ;;  %655 = vrot.lane.b32.xlu1 %v671_v17, %s1360_s0 }
  0x46   :  { %657 = vrot.lane.b32.xlu0 %v649_v20, %s1360_s0  ;;  %616 = vrot.lane.b32.xlu1 %v667_v16, %s1359_s23 }
  0x4a   :  { %638 = vrot.lane.b32.xlu0 %v667_v16, %s1361_s24  ;;  %640 = vrot.lane.b32.xlu1 %v1353_v21, %s1361_s24 }
  0x4e   :  { %653 = vrot.lane.b32.xlu0 %v667_v16, %s1360_s0  ;;  %636 = vrot.lane.b32.xlu1 %v634_v22, %s1361_s24 }
  0x52   :  { %705 = vrot.lane.b32.xlu0 %v1449_v23, %s1362_s25  ;;  %707 = vrot.lane.b32.xlu1 %v699_v24, %s1362_s25 }
  0x56   :  { %703 = vrot.lane.b32.xlu0 %v1408_v3, %s1362_s25  ;;  %730 = vrot.lane.b32.xlu1 %v1449_v23, %s1363_s26 }
  0x5a   :  { %732 = vrot.lane.b32.xlu0 %v724_v25, %s1363_s26  ;;  %728 = vrot.lane.b32.xlu1 %v1408_v3, %s1363_s26 }
  0x5e   :  { %750 = vrot.lane.b32.xlu0 %v1408_v3, %s1364_s27  ;;  %752 = vrot.lane.b32.xlu1 %v1356_v26, %s1364_s27 }
  0x62   :  { %748 = vrot.lane.b32.xlu0 %v746_v27, %s1364_s27  ;;  %767 = vrot.lane.b32.xlu1 %v1449_v23, %s1365_s28 }
  0x66   :  { %769 = vrot.lane.b32.xlu0 %v761_v28, %s1365_s28  ;;  %765 = vrot.lane.b32.xlu1 %v1408_v3, %s1365_s28 }
  0x6a   :  { %255 = vperm.xlu0 %1258, %v252_v30   ;;  %793 = vperm.xlu1 %1259, %v252_v30  }
  0x6e   :  { %408 = vrot.lane.b32.xlu0 %v1357_v1, %s1358_s22 }
  0x7c   :  { %v134_v34 = vpop.permute.xlu0 %133  ;;  %v130_v35 = vpop.permute.xlu1 %129 }
  0x80   :  { %v71_v38 = vpop.permute.xlu0 %70  ;;  %v67_v39 = vpop.permute.xlu1 %66 }
  0x84   :  { %v114_v42 = vpop.permute.xlu0 %113  ;;  %v69_v43 = vpop.permute.xlu1 %68 }
  0x85   :  { %v73_v44 = vsel %vm1816_vm0, %v67_v39, %v69_v43  ;;  %v74_v45 = vsel %vm1816_vm0, %v69_v43, %v71_v38 }
  0x86   :  { %v77_v46 = vsel %vm1477_vm1, %v73_v44, 0.0  ;;  %v78_v47 = vsel %vm1481_vm2, %v74_v45, 0.0 }
  0x87   :  { %79 = vst [vmem:[#allocation4] sm:$0xf] %v77_v46  ;;  %80 = vst [vmem:[#allocation4 + $0x8] sm:$0xf] %v78_v47 }
  0x88   :  { %v132_v49 = vpop.permute.xlu0 %131  ;;  %v112_v50 = vpop.permute.xlu1 %111 }
  0x89   :  { %v136_v51 = vsel %vm1818_vm3, %v130_v35, %v132_v49  ;;  %v137_v52 = vsel %vm1818_vm3, %v132_v49, %v134_v34  ;;  %v117_v53 = vsel %vm115_vm4, %v112_v50, %v114_v42 }
  0x8a   :  { %v140_v54 = vsel %vm1477_vm1, %v136_v51, 0.0  ;;  %v141_v55 = vsel %vm1481_vm2, %v137_v52, 0.0  ;;  %v121_v56 = vsel %vm1491_vm5, %v117_v53, 0.0 }
  0x8b   :  { %v144_v57 = vrot.slane %v140_v54, 4  ;;  %v145_v58 = vrot.slane %v141_v55, 4  ;;  %123 = vst [vmem:[#allocation4 + $0x18] sm:$0xf] %v121_v56  ;;  %v1542_v56 = vld [vmem:[%s1812_s1] sm:$0xff] }
  0x8c   :  { %v90_v59 = vpop.permute.xlu0 %89  ;;  %v92_v60 = vpop.permute.xlu1 %91 }
  0x8d   :  { %148 = vst [vmem:[#allocation4 + $0x10] sm:$0xf0] %v144_v57  ;;  %149 = vst [vmem:[#allocation4 + $0x18] sm:$0xf0] %v145_v58  ;;  %v95_v61 = vsel %vm93_vm6, %v90_v59, %v92_v60 }
  0x8e   :  { %99 = vst [vmem:[#allocation4 + $0x8] sm:$0xf0] %v95_v61 }
  0x90   :  { %v110_v63 = vpop.permute.xlu0 %109  ;;  %v88_v0 = vpop.permute.xlu1 %87 }
  0x91   :  { %v116_v2 = vsel %vm115_vm4, %v110_v63, %v112_v50  ;;  %v94_v4 = vsel %vm93_vm6, %v88_v0, %v90_v59 }
  0x92   :  { %v120_v5 = vsel %vm1505_vm7, %v116_v2, 0.0  ;;  %98 = vst [vmem:[#allocation4] sm:$0xf0] %v94_v4 }
  0x93   :  { %122 = vst [vmem:[#allocation4 + $0x10] sm:$0xf] %v120_v5 }
  0x94   :  { %v164_v6 = vpop.permute.xlu0 %163  ;;  %v166_v7 = vpop.permute.xlu1 %165  ;;  %v245_v8 = vld [vmem:[#allocation4 + $0x18] sm:$0xff] }
  0x95   :  { %v169_v9 = vsel %vm167_vm8, %v164_v6, %v166_v7  ;;  %v243_v10 = vld [vmem:[#allocation4 + $0x8] sm:$0xff] }
  0x96   :  { %v173_v11 = vsel %vm1491_vm5, %v169_v9, 0.0  ;;  %v1183_v12 = vpack.c.bf16 %v245_v8, %v243_v10 }
  0x97   :  { %v177_v13 = vrot.slane %v173_v11, 4 }
  0x98   :  { %v162_v14 = vpop.permute.xlu0 %161  ;;  %1184 = vmatprep.subr.bf16.mxu0 %v1183_v12  ;;  %v190_v15 = vpop.permute.xlu1 %189 }
  0x99   :  { %181 = vst [vmem:[#allocation4 + $0x28] sm:$0xf0] %v177_v13  ;;  %v168_v16 = vsel %vm167_vm8, %v162_v14, %v164_v6  ;;  %v242_v17 = vld [vmem:[#allocation4] sm:$0xff] }
  0x9a   :  { %v172_v18 = vsel %vm1505_vm7, %v168_v16, 0.0  ;;  %v244_v19 = vld [vmem:[#allocation4 + $0x10] sm:$0xff] }
  0x9b   :  { %v176_v20 = vrot.slane %v172_v18, 4  ;;  %v1185_v21 = vpack.c.bf16 %v244_v19, %v242_v17 }
  0x9c   :  { %v192_v22 = vpop.permute.xlu0 %191  ;;  %v188_v24 = vpop.permute.xlu1 %187 }
  0x9d   :  { %180 = vst [vmem:[#allocation4 + $0x20] sm:$0xf0] %v176_v20  ;;  %v195_v25 = vsel %vm1819_vm9, %v190_v15, %v192_v22  ;;  %v194_v26 = vsel %vm1819_vm9, %v188_v24, %v190_v15  ;;  %1186 = vmatpush1.bf16.msra.mxu0 %v1185_v21 }
  0x9e   :  { %v199_v27 = vsel %vm1481_vm2, %v195_v25, 0.0  ;;  %v198_v28 = vsel %vm1477_vm1, %v194_v26, 0.0 }
  0x9f   :  { %201 = vst [vmem:[#allocation4 + $0x38] sm:$0xf] %v199_v27  ;;  %200 = vst [vmem:[#allocation4 + $0x30] sm:$0xf] %v198_v28 }
  0xa0   :  { %v211_v29 = vpop.permute.xlu0 %210  ;;  %v213_v30 = vpop.permute.xlu1 %212  ;;  %v247_v31 = vld [vmem:[#allocation4 + $0x28] sm:$0xff] }
  0xa1   :  { %v216_v32 = vsel %vm214_vm10, %v211_v29, %v213_v30  ;;  %697 = vst [vmem:[#allocation4 + $0x28] sm:$0xf] %v1449_v23 }
  0xa2   :  { %220 = vst [vmem:[#allocation4 + $0x38] sm:$0xf0] %v216_v32 }
  0xa4   :  { %v209_v33 = vpop.permute.xlu0 %208  ;;  %v229_v34 = vpop.permute.xlu1 %228  ;;  %v246_v35 = vld [vmem:[#allocation4 + $0x20] sm:$0xff] }
  0xa5   :  { %v215_v36 = vsel %vm214_vm10, %v209_v33, %v211_v29  ;;  %696 = vst [vmem:[#allocation4 + $0x20] sm:$0xf] %v1408_v3 }
  0xa6   :  { %219 = vst [vmem:[#allocation4 + $0x30] sm:$0xf0] %v215_v36 }
  0xa8   :  { %v231_v37 = vpop.permute.xlu0 %230  ;;  %v227_v38 = vpop.permute.xlu1 %226 }
  0xa9   :  { %v234_v39 = vsel %vm232_vm11, %v229_v34, %v231_v37  ;;  %v233_v42 = vsel %vm232_vm11, %v227_v38, %v229_v34  ;;  %v249_v43 = vld [vmem:[#allocation4 + $0x38] sm:$0xff] }
  0xaa   :  { %v238_v23 = vsel %vm1491_vm5, %v234_v39, 0.0  ;;  %v237_v44 = vsel %vm1505_vm7, %v233_v42, 0.0  ;;  %v1187_v45 = vpack.c.bf16 %v249_v43, %v247_v31 }
  0xab   :  { %240 = vst [vmem:[#allocation4 + $0x48] sm:$0xf] %v238_v23  ;;  %239 = vst [vmem:[#allocation4 + $0x40] sm:$0xf] %v237_v44 }
  0xac   :  { %v675_v46 = vpop.permute.xlu0 %674  ;;  %1188 = vmatprep.subr.bf16.mxu0 %v1187_v45  ;;  %v677_v3 = vpop.permute.xlu1 %676 }
  0xad   :  { %v679_v47 = vsel %vm1818_vm3, %v675_v46, %v677_v3  ;;  %v248_v49 = vld [vmem:[#allocation4 + $0x30] sm:$0xff] }
  0xae   :  { %v683_v50 = vsel %vm1481_vm2, %v679_v47, 0.0  ;;  %v1189_v51 = vpack.c.bf16 %v248_v49, %v246_v35 }
  0xaf   :  { %v687_v52 = vrot.slane %v683_v50, 4 }
  0xb0   :  { %v673_v53 = vpop.permute.xlu0 %672  ;;  %1190 = vmatpush1.bf16.msra.mxu0 %v1189_v51  ;;  %v619_v54 = vpop.permute.xlu1 %618 }
  0xb1   :  { %691 = vst [vmem:[#allocation4 + $0x18] sm:$0xf0] %v687_v52  ;;  %v678_v55 = vsel %vm1818_vm3, %v673_v53, %v675_v46 }
  0xb2   :  { %v682_v57 = vsel %vm1477_vm1, %v678_v55, 0.0  ;;  %v251_v58 = vld [vmem:[#allocation4 + $0x48] sm:$0xf]  ;;  %v250_v59 = vld [vmem:[#allocation4 + $0x40] sm:$0xf] }
  0xb3   :  { %v686_v60 = vrot.slane %v682_v57, 4  ;;  %1148 = vmatprep.subr.msk.mxu0 %vm262_vm12, %v251_v58 }
  0xb4   :  { %v621_v61 = vpop.permute.xlu0 %620  ;;  %1149 = vmatpush1.msk.msra.mxu0 %vm262_vm12, %v250_v59  ;;  %v656_v63 = vpop.permute.xlu1 %655 }
  0xb5   :  { %690 = vst [vmem:[#allocation4 + $0x10] sm:$0xf0] %v686_v60  ;;  %v623_v0 = vsel %vm1816_vm0, %v619_v54, %v621_v61  ;;  %1150 = vmatmul.mubr.msk.f32.vlgmr.msra.gmra.mrb[0].mxu0 %vm258_vm13, %v1542_v56 }
  0xb6   :  { %v627_v2 = vsel %vm1481_vm2, %v623_v0, 0.0  ;;  %869 = vmatprep.mubr.f32.mxu0 %v1357_v1 }
  0xb7   :  { %629 = vst [vmem:[#allocation4 + $0x8] sm:$0xf] %v627_v2 }
  0xb8   :  { %v658_v4 = vpop.permute.xlu0 %657  ;;  %v617_v5 = vpop.permute.xlu1 %616 }
  0xb9   :  { %v660_v6 = vsel %vm115_vm4, %v656_v63, %v658_v4  ;;  %v622_v7 = vsel %vm1816_vm0, %v617_v5, %v619_v54 }
  0xba   :  { %v664_v8 = vsel %vm1491_vm5, %v660_v6, 0.0  ;;  %v626_v9 = vsel %vm1477_vm1, %v622_v7, 0.0 }
  0xbb   :  { %666 = vst [vmem:[#allocation4 + $0x18] sm:$0xf] %v664_v8  ;;  %628 = vst [vmem:[#allocation4] sm:$0xf] %v626_v9 }
  0xbc   :  { %v639_v10 = vpop.permute.xlu0 %638  ;;  %v641_v11 = vpop.permute.xlu1 %640 }
  0xbd   :  { %v643_v12 = vsel %vm93_vm6, %v639_v10, %v641_v11 }
  0xbe   :  { %647 = vst [vmem:[#allocation4 + $0x8] sm:$0xf0] %v643_v12 }
  0xc0   :  { %v654_v13 = vpop.permute.xlu0 %653  ;;  %v637_v14 = vpop.permute.xlu1 %636 }
  0xc1   :  { %v659_v15 = vsel %vm115_vm4, %v654_v13, %v656_v63  ;;  %v642_v16 = vsel %vm93_vm6, %v637_v14, %v639_v10 }
  0xc2   :  { %v663_v17 = vsel %vm1505_vm7, %v659_v15, 0.0  ;;  %646 = vst [vmem:[#allocation4] sm:$0xf0] %v642_v16  ;;  %v783_v22 = vld [vmem:[#allocation4 + $0x18] sm:$0xff] }
  0xc3   :  { %665 = vst [vmem:[#allocation4 + $0x10] sm:$0xf] %v663_v17 }
  0xc4   :  { %v706_v18 = vpop.permute.xlu0 %705  ;;  %v708_v19 = vpop.permute.xlu1 %707 }
  0xc5   :  { %v710_v20 = vsel %vm167_vm8, %v706_v18, %v708_v19  ;;  %v781_v21 = vld [vmem:[#allocation4 + $0x8] sm:$0xff] }
  0xc6   :  { %v714_v24 = vsel %vm1491_vm5, %v710_v20, 0.0  ;;  %v1215_v25 = vpack.c.bf16 %v783_v22, %v781_v21  ;;  %v523_v20 = vld [vmem:[%s1813_s4] sm:$0xff] }
  0xc7   :  { %v718_v26 = vrot.slane %v714_v24, 4 }
  0xc8   :  { %v704_v27 = vpop.permute.xlu0 %703  ;;  %1216 = vmatprep.subr.bf16.mxu0 %v1215_v25  ;;  %v731_v28 = vpop.permute.xlu1 %730 }
  0xc9   :  { %722 = vst [vmem:[#allocation4 + $0x28] sm:$0xf0] %v718_v26  ;;  %v709_v29 = vsel %vm167_vm8, %v704_v27, %v706_v18  ;;  %v780_v30 = vld [vmem:[#allocation4] sm:$0xff] }
  0xca   :  { %v713_v31 = vsel %vm1505_vm7, %v709_v29, 0.0  ;;  %v782_v32 = vld [vmem:[#allocation4 + $0x10] sm:$0xff] }
  0xcb   :  { %v717_v33 = vrot.slane %v713_v31, 4  ;;  %v1217_v34 = vpack.c.bf16 %v782_v32, %v780_v30 }
  0xcc   :  { %v733_v35 = vpop.permute.xlu0 %732  ;;  %v729_v36 = vpop.permute.xlu1 %728 }
  0xcd   :  { %721 = vst [vmem:[#allocation4 + $0x20] sm:$0xf0] %v717_v33  ;;  %v735_v37 = vsel %vm1819_vm9, %v731_v28, %v733_v35  ;;  %v734_v38 = vsel %vm1819_vm9, %v729_v36, %v731_v28  ;;  %1218 = vmatpush1.bf16.msra.mxu0 %v1217_v34 }
  0xce   :  { %v739_v39 = vsel %vm1481_vm2, %v735_v37, 0.0  ;;  %v738_v42 = vsel %vm1477_vm1, %v734_v38, 0.0 }
  0xcf   :  { %741 = vst [vmem:[#allocation4 + $0x38] sm:$0xf] %v739_v39  ;;  %740 = vst [vmem:[#allocation4 + $0x30] sm:$0xf] %v738_v42 }
  0xd0   :  { %v751_v43 = vpop.permute.xlu0 %750  ;;  %v753_v23 = vpop.permute.xlu1 %752  ;;  %v785_v52 = vld [vmem:[#allocation4 + $0x28] sm:$0xff] }
  0xd1   :  { %v755_v44 = vsel %vm214_vm10, %v751_v43, %v753_v23 }
  0xd2   :  { %759 = vst [vmem:[#allocation4 + $0x38] sm:$0xf0] %v755_v44 }
  0xd4   :  { %v749_v45 = vpop.permute.xlu0 %748  ;;  %v768_v46 = vpop.permute.xlu1 %767  ;;  %v784_v58 = vld [vmem:[#allocation4 + $0x20] sm:$0xff] }
  0xd5   :  { %v754_v3 = vsel %vm214_vm10, %v749_v45, %v751_v43 }
  0xd6   :  { %758 = vst [vmem:[#allocation4 + $0x30] sm:$0xf0] %v754_v3 }
  0xd8   :  { %v770_v47 = vpop.permute.xlu0 %769  ;;  %v766_v49 = vpop.permute.xlu1 %765 }
  0xd9   :  { %v772_v50 = vsel %vm232_vm11, %v768_v46, %v770_v47  ;;  %v771_v51 = vsel %vm232_vm11, %v766_v49, %v768_v46  ;;  %v787_v53 = vld [vmem:[#allocation4 + $0x38] sm:$0xff] }
  0xda   :  { %v776_v54 = vsel %vm1491_vm5, %v772_v50, 0.0  ;;  %v775_v55 = vsel %vm1505_vm7, %v771_v51, 0.0  ;;  %v1219_v57 = vpack.c.bf16 %v787_v53, %v785_v52 }
  0xdb   :  { %778 = vst [vmem:[#allocation4 + $0x48] sm:$0xf] %v776_v54  ;;  %777 = vst [vmem:[#allocation4 + $0x40] sm:$0xf] %v775_v55 }
  0xdc   :  { %1220 = vmatprep.subr.bf16.mxu0 %v1219_v57 }
  0xdd   :  { %v786_v59 = vld [vmem:[#allocation4 + $0x30] sm:$0xff] }
  0xde   :  { %v1221_v60 = vpack.c.bf16 %v786_v59, %v784_v58 }
  0xe0   :  { %1222 = vmatpush1.bf16.msra.mxu0 %v1221_v60 }
  0xe2   :  { %v789_v61 = vld [vmem:[#allocation4 + $0x48] sm:$0xf]  ;;  %v788_v63 = vld [vmem:[#allocation4 + $0x40] sm:$0xf] }
  0xe3   :  { %1153 = vmatprep.subr.msk.mxu0 %vm262_vm12, %v789_v61 }
  0xe4   :  { %1154 = vmatpush1.msk.msra.mxu0 %vm262_vm12, %v788_v63  ;;  %vm1679_vm12 = vmpackc.low %vm1367_vm14, %vm1477_vm1 }
  0xe5   :  { %1155 = vmatmul.mubr.msk.f32.vlgmr.msra.gmra.mrb[2].mxu0 %vm258_vm13, %v1542_v56  ;;  %vm1817_vm13 = vmpackc.low %vm1481_vm2, %vm1491_vm5 }
  0xe9   :  { %v256_v0 = vpop.permute.xlu0 %255  ;;  %v794_v10 = vpop.permute.xlu1 %793 }
  0xed   :  { %v409_v21 = vpop.permute.xlu0 %408 }
 0x188   :  { %v335_v2 = vpop.f32.mrb[0].mxu0 }
 0x189   :  { %v336_v4 = vadd.f32 %v335_v2, %v256_v0  ;;  %v337_v5 = vpop.f32.mrb[1].mxu0 }
 0x18a   :  { %v338_v6 = vadd.f32 %v337_v5, %v256_v0 }
 0x18b   :  { %v1589_v7 = vmax.f32 %v336_v4, 0.0 }
 0x18c   :  { %v1591_v8 = vmax.f32 %v338_v6, 0.0 }
 0x18d   :  { %452 = vrot.lane.b32.xlu1 %v1589_v7, %s1363_s26  ;;  %432 = vrot.lane.b32.xlu0 %v1589_v7, %s1362_s25 }
 0x18e   :  { %v1260_v9 = vpack.i.bf16 %v1591_v8, %v1589_v7  ;;  %v1280_v56 = vpack.i.bf16 %v1357_v1, %v1591_v8 }
 0x191   :  { %1261 = vrot.lane.b32.xlu1 %v1260_v9, %s1359_s23  ;;  %1266 = vrot.lane.b32.xlu0 %v1260_v9, %s1361_s24 }
 0x195   :  { %1271 = vrot.lane.b32.xlu1 %v1260_v9, %s1360_s0  ;;  %1276 = vrot.lane.b32.xlu0 %v1260_v9, %s1358_s22 }
 0x199   :  { %1281 = vrot.lane.b32.xlu1 %v1280_v56, %s1362_s25  ;;  %1291 = vrot.lane.b32.xlu0 %v1280_v56, %s1364_s27 }
 0x19d   :  { %1286 = vrot.lane.b32.xlu1 %v1280_v56, %s1363_s26 }
 0x1b8   :  { %v871_v11 = vpop.f32.mrb[2].mxu0 }
 0x1b9   :  { %v872_v12 = vadd.f32 %v871_v11, %v794_v10  ;;  %v873_v13 = vpop.f32.mrb[3].mxu0 }
 0x1ba   :  { %v874_v16 = vadd.f32 %v873_v13, %v794_v10 }
 0x1bb   :  { %v1608_v14 = vmax.f32 %v872_v12, 0.0 }
 0x1bc   :  { %v1621_v17 = vmax.f32 %v874_v16, 0.0 }
 0x1bd   :  { %v1300_v15 = vpack.i.bf16 %v1608_v14, %v1357_v1 }
 0x1be   :  { %v1315_v18 = vpack.i.bf16 %v1357_v1, %v1621_v17  ;;  %v1325_v19 = vpack.i.bf16 %v1621_v17, %v1608_v14 }
 0x1bf   :  { %1301 = vrot.lane.b32.xlu0 %v1300_v15, %s1361_s24  ;;  %1296 = vrot.lane.b32.xlu1 %v1300_v15, %s1359_s23 }
 0x1c3   :  { %472 = vrot.lane.b32.xlu0 %v1589_v7, %s1364_s27  ;;  %492 = vrot.lane.b32.xlu1 %v1591_v8, %s1365_s28 }
 0x1c7   :  { %494 = vrot.lane.b32.xlu0 %v1357_v1, %s1365_s28  ;;  %1306 = vrot.lane.b32.xlu1 %v1300_v15, %s1360_s0 }
 0x1cb   :  { %944 = vrot.lane.b32.xlu0 %v1357_v1, %s1358_s22  ;;  %490 = vrot.lane.b32.xlu1 %v1589_v7, %s1365_s28 }
 0x1cf   :  { %1316 = vrot.lane.b32.xlu0 %v1315_v18, %s1361_s24  ;;  %1311 = vrot.lane.b32.xlu1 %v1315_v18, %s1359_s23 }
 0x1d3   :  { %1321 = vrot.lane.b32.xlu0 %v1315_v18, %s1360_s0  ;;  %988 = vrot.lane.b32.xlu1 %v1608_v14, %s1363_s26 }
 0x1d7   :  { %968 = vrot.lane.b32.xlu0 %v1608_v14, %s1362_s25  ;;  %1326 = vrot.lane.b32.xlu1 %v1325_v19, %s1358_s22 }
 0x1db   :  { %1341 = vrot.lane.b32.xlu0 %v1315_v18, %s1364_s27  ;;  %1331 = vrot.lane.b32.xlu1 %v1315_v18, %s1362_s25 }
 0x1df   :  { %1008 = vrot.lane.b32.xlu0 %v1608_v14, %s1364_s27  ;;  %1336 = vrot.lane.b32.xlu1 %v1315_v18, %s1363_s26 }
 0x1e3   :  { %1030 = vrot.lane.b32.xlu0 %v1357_v1, %s1365_s28  ;;  %1028 = vrot.lane.b32.xlu1 %v1621_v17, %s1365_s28 }
 0x1e7   :  { %526 = vperm.xlu0 %1258, %v523_v20   ;;  %1026 = vrot.lane.b32.xlu1 %v1608_v14, %s1365_s28 }
 0x1eb   :  { %1062 = vperm.xlu1 %1259, %v523_v20  }
 0x1ff   :  { %v1653_v22 = vpop.permute.xlu1 %452  ;;  %v433_v24 = vpop.permute.xlu0 %432 }
 0x203   :  { %v1262_v25 = vpop.permute.xlu1 %1261  ;;  %v1267_v26 = vpop.permute.xlu0 %1266 }
 0x204   :  { %v1264_v27 = vunpack.i.h.bf16 %v1262_v25  ;;  %v1263_v28 = vunpack.i.l.bf16 %v1262_v25  ;;  %v1269_v29 = vunpack.i.h.bf16 %v1267_v26  ;;  %v1268_v30 = vunpack.i.l.bf16 %v1267_v26 }
 0x206   :  { %v357_v31 = vsel %vm1816_vm0, %v1263_v28, %v1264_v27  ;;  %v377_v32 = vsel %vm93_vm6, %v1268_v30, %v1269_v29 }
 0x207   :  { %v1191_v34 = vpack.c.bf16 %v377_v32, %v357_v31  ;;  %v1272_v35 = vpop.permute.xlu1 %1271  ;;  %v1277_v36 = vpop.permute.xlu0 %1276 }
 0x208   :  { %v1274_v42 = vunpack.i.h.bf16 %v1272_v35  ;;  %v1273_v43 = vunpack.i.l.bf16 %v1272_v35  ;;  %v1279_v23 = vunpack.i.h.bf16 %v1277_v36  ;;  %v1278_v44 = vunpack.i.l.bf16 %v1277_v36 }
 0x209   :  { %1193 = vmatprep.subr.msk.bf16.mxu1 %vm1660_vm15, %v1191_v34 }
 0x20a   :  { %v395_v49 = vsel %vm115_vm4, %v1273_v43, %v1274_v42  ;;  %v415_v50 = vsel %vm1818_vm3, %v1278_v44, %v1279_v23  ;;  %v414_v9 = vsel %vm1818_vm3, %v409_v21, %v1278_v44  ;;  %vm1725_vm3 = vmpackc.low %vm1505_vm7, %vm1367_vm14 }
 0x20b   :  { %v1282_v37 = vpop.permute.xlu1 %1281  ;;  %v1292_v39 = vpop.permute.xlu0 %1291  ;;  %v1197_v58 = vpack.c.bf16 %v415_v50, %v395_v49 }
 0x20c   :  { %v1284_v59 = vunpack.i.h.bf16 %v1282_v37  ;;  %v1283_v60 = vunpack.i.l.bf16 %v1282_v37  ;;  %v1294_v5 = vunpack.i.h.bf16 %v1292_v39  ;;  %v1293_v6 = vunpack.i.l.bf16 %v1292_v39 }
 0x20e   :  { %v439_v2 = vsel %vm167_vm8, %v1283_v60, %v1284_v59  ;;  %v438_v18 = vsel %vm167_vm8, %v433_v24, %v1283_v60  ;;  %v479_v20 = vsel %vm214_vm10, %v1293_v6, %v1294_v5 }
 0x20f   :  { %v1287_v38 = vpop.permute.xlu1 %1286  ;;  %v1203_v16 = vpack.c.bf16 %v439_v2, %v1591_v8  ;;  %v1206_v21 = vpack.c.bf16 %v438_v18, %v1589_v7 }
 0x210   :  { %v1289_v4 = vunpack.i.h.bf16 %v1287_v38  ;;  %v1288_v10 = vunpack.i.l.bf16 %v1287_v38 }
 0x212   :  { %v459_v19 = vsel %vm1819_vm9, %v1288_v10, %v1289_v4 }
 0x213   :  { %v1209_v26 = vpack.c.bf16 %v479_v20, %v459_v19 }
 0x231   :  { %v1666_v45 = vpop.permute.xlu0 %1301  ;;  %v1668_v46 = vpop.permute.xlu1 %1296 }
 0x232   :  { %v1303_v3 = vunpack.i.l.bf16 %v1666_v45  ;;  %v1298_v47 = vunpack.i.l.bf16 %v1668_v46  ;;  %v1304_v7 = vunpack.i.h.bf16 %v1666_v45  ;;  %v1299_v34 = vunpack.i.h.bf16 %v1668_v46 }
 0x234   :  { %v356_v51 = vsel %vm1816_vm0, %v1298_v47, %v1263_v28  ;;  %v376_v52 = vsel %vm93_vm6, %v1303_v3, %v1268_v30  ;;  %vm1201_vm0 = vmpackc.low %vm1477_vm1, %vm1505_vm7  ;;  %v458_v30 = vsel %vm1819_vm9, %v1653_v22, %v1288_v10  ;;  %v504_v47 = vld [vmem:[%s1814_s3] sm:$0xff] }
 0x235   :  { %v473_v54 = vpop.permute.xlu0 %472  ;;  %v493_v55 = vpop.permute.xlu1 %492  ;;  %v1194_v57 = vpack.c.bf16 %v376_v52, %v356_v51 }
 0x236   :  { %v478_v27 = vsel %vm214_vm10, %v473_v54, %v1293_v6 }
 0x237   :  { %1196 = vmatpush1.bf16.msk.msra.mxu1 %vm1679_vm12, %v1194_v57  ;;  %v1212_v35 = vpack.c.bf16 %v478_v27, %v458_v30 }
 0x238   :  { %1199 = vmatprep.subr.msk.bf16.mxu1 %vm1817_vm13, %v1197_v58  ;;  %vm1707_vm13 = vmpackc.low %vm1491_vm5, %vm1367_vm14  ;;  %vm1836_vm14 = vcmask 138240  }
 0x239   :  { %v495_v61 = vpop.permute.xlu0 %494  ;;  %v1694_v63 = vpop.permute.xlu1 %1306  ;;  %vm1837_vm9 = vmmov %vm1836_vm14 }
 0x23a   :  { %v1308_v0 = vunpack.i.l.bf16 %v1694_v63  ;;  %v497_v38 = vsel %vm232_vm11, %v493_v55, %v495_v61  ;;  %v1309_v44 = vunpack.i.h.bf16 %v1694_v63 }
 0x23c   :  { %v394_v56 = vsel %vm115_vm4, %v1308_v0, %v1273_v43 }
 0x23d   :  { %v1200_v11 = vpack.c.bf16 %v414_v9, %v394_v56  ;;  %v945_v12 = vpop.permute.xlu0 %944  ;;  %v491_v13 = vpop.permute.xlu1 %490 }
 0x23e   :  { %v496_v45 = vsel %vm232_vm11, %v491_v13, %v493_v55 }
 0x23f   :  { %1202 = vmatpush1.bf16.msk.msra.mxu1 %vm1201_vm0, %v1200_v11 }
 0x240   :  { %1205 = vmatprep.subr.msk.bf16.mxu1 %vm1707_vm13, %v1203_v16 }
 0x241   :  { %v1317_v24 = vpop.permute.xlu0 %1316  ;;  %v1312_v25 = vpop.permute.xlu1 %1311 }
 0x242   :  { %v1318_v28 = vunpack.i.l.bf16 %v1317_v24  ;;  %v1313_v29 = vunpack.i.l.bf16 %v1312_v25  ;;  %v1319_v31 = vunpack.i.h.bf16 %v1317_v24  ;;  %v1314_v32 = vunpack.i.h.bf16 %v1312_v25 }
 0x243   :  { %1208 = vmatpush1.bf16.msk.msra.mxu1 %vm1725_vm3, %v1206_v21 }
 0x244   :  { %1211 = vmatprep.subr.msk.bf16.mxu1 %vm1660_vm15, %v1209_v26  ;;  %v913_v39 = vsel %vm93_vm6, %v1304_v7, %v1318_v28  ;;  %v893_v42 = vsel %vm1836_vm14, %v1299_v34, %v1313_v29  ;;  %v912_v22 = vsel %vm93_vm6, %v1319_v31, %v1304_v7  ;;  %v892_v43 = vsel %vm1837_vm9, %v1314_v32, %v1299_v34 }
 0x245   :  { %v1322_v36 = vpop.permute.xlu0 %1321  ;;  %v989_v37 = vpop.permute.xlu1 %988  ;;  %vm529_vm14 = vcmask 588800   ;;  %v1223_v49 = vpack.c.bf16 %v913_v39, %v893_v42  ;;  %v1226_v54 = vpack.c.bf16 %v912_v22, %v892_v43  ;;  %vm1838_vm6 = vcmask 7168  }
 0x246   :  { %v1323_v23 = vunpack.i.l.bf16 %v1322_v36  ;;  %v1324_v50 = vunpack.i.h.bf16 %v1322_v36  ;;  %vm1839_vm9 = vmmov %vm1838_vm6 }
 0x247   :  { %1214 = vmatpush1.bf16.msk.msra.mxu1 %vm1679_vm12, %v1212_v35 }
 0x248   :  { %1169 = vmatprep.subr.msk.mxu1 %vm1491_vm5, %v497_v38  ;;  %v931_v57 = vsel %vm115_vm4, %v1309_v44, %v1323_v23  ;;  %v930_v63 = vsel %vm115_vm4, %v1324_v50, %v1309_v44 }
 0x249   :  { %v969_v46 = vpop.permute.xlu0 %968  ;;  %v1327_v3 = vpop.permute.xlu1 %1326 }
 0x24a   :  { %v1329_v51 = vunpack.i.h.bf16 %v1327_v3  ;;  %v1328_v52 = vunpack.i.l.bf16 %v1327_v3 }
 0x24b   :  { %1170 = vmatpush1.msk.msra.mxu1 %vm1505_vm7, %v496_v45 }
 0x24c   :  { %v950_v58 = vsel %vm1838_vm6, %v945_v12, %v1328_v52  ;;  %v951_v55 = vsel %vm1839_vm9, %v1328_v52, %v1329_v51  ;;  %1151 = vmatmul.mubr.msk.f32.vlgmr.msra.gmra.mrb[0].mxu1 %vm529_vm14, %v504_v47  ;;  %1225 = vmatprep.subr.msk.bf16.mxu1 %vm1660_vm15, %v1223_v49  ;;  %vm1840_vm6 = vmpackc.low %vm1481_vm2, %vm1491_vm5  ;;  %vm1841_vm2 = vcmask 924672  }
 0x24d   :  { %v1229_v59 = vpack.c.bf16 %v951_v55, %v931_v57  ;;  %v1342_v60 = vpop.permute.xlu0 %1341  ;;  %v1332_v61 = vpop.permute.xlu1 %1331  ;;  %1228 = vmatpush1.bf16.msk.msra.mxu1 %vm1679_vm12, %v1226_v54  ;;  %1132 = vmatprep.mubr.f32.mxu1 %v1357_v1  ;;  %v1232_v4 = vpack.c.bf16 %v950_v58, %v930_v63  ;;  %vm1842_vm4 = vmmov %vm1841_vm2 }
 0x24e   :  { %v1334_v0 = vunpack.i.h.bf16 %v1332_v61  ;;  %v1333_v2 = vunpack.i.l.bf16 %v1332_v61  ;;  %v1344_v5 = vunpack.i.h.bf16 %v1342_v60  ;;  %v1343_v6 = vunpack.i.l.bf16 %v1342_v60 }
 0x24f   :  { %1231 = vmatprep.subr.msk.bf16.mxu1 %vm1840_vm6, %v1229_v59 }
 0x250   :  { %v974_v9 = vsel %vm167_vm8, %v969_v46, %v1333_v2  ;;  %v975_v56 = vsel %vm167_vm8, %v1333_v2, %v1334_v0  ;;  %v1015_v16 = vsel %vm214_vm10, %v1343_v6, %v1344_v5 }
 0x251   :  { %v1235_v10 = vpack.c.bf16 %v975_v56, %v1621_v17  ;;  %v1009_v1 = vpop.permute.xlu0 %1008  ;;  %v1337_v11 = vpop.permute.xlu1 %1336  ;;  %1234 = vmatpush1.bf16.msk.msra.mxu1 %vm1201_vm0, %v1232_v4  ;;  %v1238_v13 = vpack.c.bf16 %v974_v9, %v1608_v14 }
 0x252   :  { %v1339_v41 = vunpack.i.h.bf16 %v1337_v11  ;;  %v1338_v12 = vunpack.i.l.bf16 %v1337_v11  ;;  %v1014_v40 = vsel %vm214_vm10, %v1009_v1, %v1343_v6 }
 0x253   :  { %1237 = vmatprep.subr.msk.bf16.mxu1 %vm1707_vm13, %v1235_v10 }
 0x254   :  { %v994_v18 = vsel %vm1841_vm2, %v989_v37, %v1338_v12  ;;  %v995_v17 = vsel %vm1842_vm4, %v1338_v12, %v1339_v41 }
 0x255   :  { %v1241_v19 = vpack.c.bf16 %v1015_v16, %v995_v17  ;;  %v1029_v20 = vpop.permute.xlu1 %1028  ;;  %1240 = vmatpush1.bf16.msk.msra.mxu1 %vm1725_vm3, %v1238_v13  ;;  %v1031_v21 = vpop.permute.xlu0 %1030  ;;  %v1244_v24 = vpack.c.bf16 %v1014_v40, %v994_v18 }
 0x256   :  { %v1033_v14 = vsel %vm232_vm11, %v1029_v20, %v1031_v21 }
 0x257   :  { %1243 = vmatprep.subr.msk.bf16.mxu1 %vm1660_vm15, %v1241_v19 }
 0x259   :  { %v1027_v15 = vpop.permute.xlu1 %1026  ;;  %1246 = vmatpush1.bf16.msk.msra.mxu1 %vm1679_vm12, %v1244_v24 }
 0x25a   :  { %1181 = vmatprep.subr.msk.mxu1 %vm1491_vm5, %v1033_v14  ;;  %v1032_v25 = vsel %vm232_vm11, %v1027_v15, %v1029_v20 }
 0x25d   :  { %1182 = vmatpush1.msk.msra.mxu1 %vm1505_vm7, %v1032_v25 }
 0x25e   :  { %1156 = vmatmul.mubr.msk.f32.vlgmr.msra.gmra.mrb[2].mxu1 %vm529_vm14, %v504_v47 }
 0x266   :  { %v527_v8 = vpop.permute.xlu0 %526 }
 0x26a   :  { %v1063_v48 = vpop.permute.xlu1 %1062 }
 0x31f   :  { %v599_v26 = vpop.f32.mrb[0].mxu1 }
 0x320   :  { %v600_v33 = vadd.f32 %v599_v26, %v527_v8  ;;  %v601_v27 = vpop.f32.mrb[1].mxu1 }
 0x321   :  { %v602_v28 = vadd.f32 %v601_v27, %v527_v8 }
 0x322   :  { %v604_v29 = vmax.f32 %v600_v33, 0.0 }
 0x323   :  { %v605_v30 = vmax.f32 %v602_v28, 0.0 }
 0x324   :  { %606 = vst [vmem:[%s1815_s5] sm:$0xff] %v604_v29 }
 0x325   :  { %607 = vst [vmem:[%s1815_s5 + $0x8] sm:$0xff] %v605_v30 }
 0x331   :  { %v1134_v62 = vpop.f32.mrb[2].mxu1 }
 0x332   :  { %v1135_v53 = vadd.f32 %v1134_v62, %v1063_v48  ;;  %v1136_v31 = vpop.f32.mrb[3].mxu1 }
 0x333   :  { %v1137_v32 = vadd.f32 %v1136_v31, %v1063_v48 }
 0x334   :  { %v1139_v7 = vmax.f32 %v1135_v53, 0.0 }
 0x335   :  { %v1140_v34 = vmax.f32 %v1137_v32, 0.0 }
 0x336   :  { %1157 = vst [vmem:[%s1815_s5 + $0x10] sm:$0xff] %v1139_v7 }
 0x337   :  { %1158 = vst [vmem:[%s1815_s5 + $0x18] sm:$0xff] %v1140_v34 }

</bundles_post_ra>
